<compile_context>
chip_gen: v6e
topology: v6e:2x2x1
jax: 0.10.0
libtpu: 0.0.40
codegen_flags: <defaults>
</compile_context>

<pallas_src>
from collections import namedtuple

import numpy as np
import jax
import jax.numpy as jnp
from jax.experimental import pallas as pl
from jax.experimental.pallas import tpu as pltpu


LayerMeta = namedtuple("LayerMeta", ["taps", "pooled", "rows_out", "cols_half", "act"])


# --------------------------------------------------------------------------
# One-time weight repacking (host side, init time) -- feedback: precompute
# weight layouts once instead of per forward call.
# --------------------------------------------------------------------------
def _conv_pool_mats(w, b, H, W, stride, pad):
    """Conv2d(stride,pad) + ReLU + MaxPool2d(2,2), folded into row-matmul form.

    Activations are (H, W*Cin) per sample.  For kernel row `a`:
      A[a] : (W*Cin, 2*(Wo/2)*Cout)  columns = [even out-cols | odd out-cols]
      R[a] : (2*(Ho/2), H)           rows    = [even out-rows ; odd out-rows]
    so conv_pre = sum_a R[a] @ (x @ A[a]) and the 2x2 pool is the elementwise
    max of its four row/column quadrants.
    """
    w = np.asarray(w, np.float32)
    b = np.asarray(b, np.float32)
    Cout, Cin, kh, kw = w.shape
    Ho = (H + 2 * pad - kh) // stride + 1
    Wo = (W + 2 * pad - kw) // stride + 1
    assert Ho % 2 == 0 and Wo % 2 == 0
    Hp, Wp = Ho // 2, Wo // 2

    A = np.zeros((kh, W * Cin, 2 * Wp * Cout), np.float32)
    for a in range(kh):
        for j in range(Wo):
            par, jj = j % 2, j // 2
            col0 = par * Wp * Cout + jj * Cout
            for t in range(kw):
                c = stride * j + t - pad
                if 0 <= c < W:
                    A[a, c * Cin:(c + 1) * Cin, col0:col0 + Cout] = w[:, :, a, t].T

    R = np.zeros((kh, 2 * Hp, H), np.float32)
    for a in range(kh):
        for i in range(Ho):
            par, ii = i % 2, i // 2
            r = stride * i + a - pad
            if 0 <= r < H:
                R[a, par * Hp + ii, r] = 1.0

    bias = np.tile(b, Wp)[None, :]
    meta = LayerMeta(taps=kh, pooled=True, rows_out=Hp, cols_half=Wp * Cout, act="relu")
    return [A, R, bias], meta, (Hp, Wp, Cout)


def _convT_mats(w, b, Hin, Win, stride, pad, act):
    """ConvTranspose2d folded into the same row-matmul form.  No zero-dilated
    input is ever materialized: the stride-phase structure lives in the
    precomputed A/R matrices, so K = Win*Cin real taps only."""
    w = np.asarray(w, np.float32)   # (Cin, Cout, kh, kw)  -- PyTorch layout
    b = np.asarray(b, np.float32)
    Cin, Cout, kh, kw = w.shape
    Hout = (Hin - 1) * stride - 2 * pad + kh
    Wout = (Win - 1) * stride - 2 * pad + kw

    A = np.zeros((kh, Win * Cin, Wout * Cout), np.float32)
    for a in range(kh):
        for jp in range(Win):
            for t in range(kw):
                j = stride * jp + t - pad
                if 0 <= j < Wout:
                    A[a, jp * Cin:(jp + 1) * Cin, j * Cout:(j + 1) * Cout] = w[:, :, a, t]

    R = np.zeros((kh, Hout, Hin), np.float32)
    for a in range(kh):
        for ip in range(Hin):
            i = stride * ip + a - pad
            if 0 <= i < Hout:
                R[a, i, ip] = 1.0

    bias = np.tile(b, Wout)[None, :]
    meta = LayerMeta(taps=kh, pooled=False, rows_out=Hout, cols_half=Wout * Cout, act=act)
    return [A, R, bias], meta, (Hout, Wout, Cout)


def prepare_ae(params, H=28, W=28):
    """One-time repack of the PyTorch-layout weights into fused-kernel matrices."""
    mats, metas = [], []
    m, meta, (H, W, C) = _conv_pool_mats(params["enc1_w"], params["enc1_b"], H, W, 3, 1)
    mats += m; metas.append(meta)
    m, meta, (H, W, C) = _conv_pool_mats(params["enc2_w"], params["enc2_b"], H, W, 2, 2)
    mats += m; metas.append(meta)
    m, meta, (H, W, C) = _convT_mats(params["dec1_w"], params["dec1_b"], H, W, 2, 0, "relu")
    mats += m; metas.append(meta)
    m, meta, (H, W, C) = _convT_mats(params["dec2_w"], params["dec2_b"], H, W, 3, 1, "relu")
    mats += m; metas.append(meta)
    m, meta, (H, W, C) = _convT_mats(params["dec3_w"], params["dec3_b"], H, W, 2, 1, "tanh")
    mats += m; metas.append(meta)
    assert (H, W, C) == (28, 28, 1)
    return [jnp.asarray(x) for x in mats], tuple(metas)


# --------------------------------------------------------------------------
# Fused Pallas kernel: whole AE forward for one sample per grid step
# --------------------------------------------------------------------------
def make_ae_kernel(metas):
    n_layers = len(metas)

    def kernel(*refs):
        x_ref = refs[0]
        o_ref = refs[-1]
        w_refs = refs[1:-1]
        assert len(w_refs) == 3 * n_layers

        h = x_ref[0]                                    # (H0, W0*C0), stays on-chip
        for li, meta in enumerate(metas):
            a_ref, r_ref, b_ref = w_refs[3 * li:3 * li + 3]
            y = None
            for a in range(meta.taps):                  # statically unrolled (<= 5)
                z = jnp.dot(h, a_ref[a], preferred_element_type=jnp.float32)
                t = jnp.dot(r_ref[a], z, preferred_element_type=jnp.float32)
                y = t if y is None else y + t
            if meta.pooled:                             # fused MaxPool2d(2,2) epilogue
                hp, ch = meta.rows_out, meta.cols_half
                y = jnp.maximum(jnp.maximum(y[:hp, :ch], y[:hp, ch:]),
                                jnp.maximum(y[hp:, :ch], y[hp:, ch:]))
            y = y + b_ref[...]
            if meta.act == "relu":
                y = jnp.maximum(y, 0.0)
            else:
                y = jnp.tanh(y)
            h = y
        o_ref[0] = h                                    # single small HBM store

    return kernel


def _const_map(ndim):
    return lambda b: (0,) * ndim


def ae_forward(x, mats, metas):
    """x: (B, 1, H, W) NCHW float32 -> (B, 1, H, W)."""
    B, Cin, H, W = x.shape
    assert Cin == 1  # Cin==1 -> NCHW flattening already matches the (H, W*C) layout
    x2 = x.reshape(B, H, W)

    Hout = metas[-1].rows_out
    WCout = metas[-1].cols_half                         # Wout * Cout  (Cout == 1)

    in_specs = [pl.BlockSpec((1, H, W), lambda b: (b, 0, 0))]
    for m in mats:                                      # weights: constant block index
        in_specs.append(pl.BlockSpec(m.shape, _const_map(m.ndim)))

    out = pl.pallas_call(
        make_ae_kernel(metas),
        grid=(B,),
        in_specs=in_specs,
        out_specs=pl.BlockSpec((1, Hout, WCout), lambda b: (b, 0, 0)),
        out_shape=jax.ShapeDtypeStruct((B, Hout, WCout), jnp.float32),
        compiler_params=pltpu.CompilerParams(
            dimension_semantics=("parallel",)),         # batch -> 2nd TC on v7x
    )(x2, *mats)
    return out.reshape(B, 1, Hout, WCout)


# --------------------------------------------------------------------------
# Pure-XLA reference (for validation only)
# --------------------------------------------------------------------------
def _conv_ref(x, w, b, stride, pad):
    y = jax.lax.conv_general_dilated(
        x, w, window_strides=(stride, stride),
        padding=[(pad, pad), (pad, pad)],
        dimension_numbers=("NCHW", "OIHW", "NCHW"),
        precision=jax.lax.Precision.HIGHEST)
    return y + b.reshape(1, -1, 1, 1)


def _convT_ref(x, w, b, stride, pad):
    kh, kw = w.shape[2], w.shape[3]
    w_conv = jnp.flip(w, (2, 3)).transpose(1, 0, 2, 3)
    y = jax.lax.conv_general_dilated(
        x, w_conv, window_strides=(1, 1),
        padding=[(kh - 1 - pad, kh - 1 - pad), (kw - 1 - pad, kw - 1 - pad)],
        lhs_dilation=(stride, stride),
        dimension_numbers=("NCHW", "OIHW", "NCHW"),
        precision=jax.lax.Precision.HIGHEST)
    return y + b.reshape(1, -1, 1, 1)


def _pool_ref(x):
    return jnp.maximum(jnp.maximum(x[:, :, 0::2, 0::2], x[:, :, 0::2, 1::2]),
                       jnp.maximum(x[:, :, 1::2, 0::2], x[:, :, 1::2, 1::2]))


def ae_reference(x, params):
    h = jax.nn.relu(_conv_ref(x, params["enc1_w"], params["enc1_b"], 3, 1))
    h = _pool_ref(h)
    h = jax.nn.relu(_conv_ref(h, params["enc2_w"], params["enc2_b"], 2, 2))
    h = _pool_ref(h)
    h = jax.nn.relu(_convT_ref(h, params["dec1_w"], params["dec1_b"], 2, 0))
    h = jax.nn.relu(_convT_ref(h, params["dec2_w"], params["dec2_b"], 3, 1))
    return jnp.tanh(_convT_ref(h, params["dec3_w"], params["dec3_b"], 2, 1))


# --------------------------------------------------------------------------
# PyTorch-style init
# --------------------------------------------------------------------------
def init_params(key):
    def u(k, shape, fan_in):
        bound = 1.0 / jnp.sqrt(float(fan_in))
        return jax.random.uniform(k, shape, jnp.float32, -bound, bound)

    ks = jax.random.split(key, 10)
    return {
        "enc1_w": u(ks[0], (16, 1, 3, 3), 1 * 9),   "enc1_b": u(ks[1], (16,), 1 * 9),
        "enc2_w": u(ks[2], (8, 16, 3, 3), 16 * 9),  "enc2_b": u(ks[3], (8,), 16 * 9),
        "dec1_w": u(ks[4], (8, 16, 3, 3), 16 * 9),  "dec1_b": u(ks[5], (16,), 16 * 9),
        "dec2_w": u(ks[6], (16, 8, 5, 5), 8 * 25),  "dec2_b": u(ks[7], (8,), 8 * 25),
        "dec3_w": u(ks[8], (8, 1, 2, 2), 1 * 4),    "dec3_b": u(ks[9], (1,), 1 * 4),
    }


if __name__ == "__main__":
    key = jax.random.PRNGKey(0)
    k_x, k_p = jax.random.split(key)

    # MNIST-style input implied by the module: (B=2, C=1, H=28, W=28)
    x = jax.random.normal(k_x, (2, 1, 28, 28), dtype=jnp.float32)
    params = init_params(k_p)

    mats, metas = prepare_ae(params)                    # one-time weight repack

    fwd = jax.jit(lambda xx, mm: ae_forward(xx, mm, metas))
    out = jax.block_until_ready(fwd(x, mats))

    assert out.shape == (2, 1, 28, 28), out.shape
    assert out.dtype == jnp.float32
    assert bool(jnp.all(jnp.isfinite(out)))
    assert bool(jnp.all(jnp.abs(out) <= 1.0 + 1e-6))    # tanh range

    # Validate against a plain-XLA reference of the same network.
    ref = jax.block_until_ready(jax.jit(ae_reference)(x, params))
    err = float(jnp.max(jnp.abs(out - ref)))
    assert err < 2e-2, f"max abs error vs XLA reference: {err}"

    print("KERNEL_OK")
</pallas_src>

<mosaic_0001>
module attributes {stable_mosaic.version = 11 : i64} {
  func.func @kernel(%arg0: i32, %arg1: memref<1x28x28xf32, #tpu.memory_space<vmem>>, %arg2: memref<3x28x160xf32, #tpu.memory_space<vmem>>, %arg3: memref<3x10x28xf32, #tpu.memory_space<vmem>>, %arg4: memref<1x80xf32, #tpu.memory_space<vmem>>, %arg5: memref<3x80x32xf32, #tpu.memory_space<vmem>>, %arg6: memref<3x4x5xf32, #tpu.memory_space<vmem>>, %arg7: memref<1x16xf32, #tpu.memory_space<vmem>>, %arg8: memref<3x16x80xf32, #tpu.memory_space<vmem>>, %arg9: memref<3x5x2xf32, #tpu.memory_space<vmem>>, %arg10: memref<1x80xf32, #tpu.memory_space<vmem>>, %arg11: memref<5x80x120xf32, #tpu.memory_space<vmem>>, %arg12: memref<5x15x5xf32, #tpu.memory_space<vmem>>, %arg13: memref<1x120xf32, #tpu.memory_space<vmem>>, %arg14: memref<2x120x28xf32, #tpu.memory_space<vmem>>, %arg15: memref<2x28x15xf32, #tpu.memory_space<vmem>>, %arg16: memref<1x28xf32, #tpu.memory_space<vmem>>, %arg17: memref<1x28x28xf32, #tpu.memory_space<vmem>>) attributes {dimension_semantics = [#tpu.dimension_semantics<parallel>], iteration_bounds = array<i64: 2>, scalar_prefetch = 0 : i64, scratch_operands = 0 : i64, tpu.core_type = #tpu.core_type<tc>, window_params = [{transform_indices = @transform_0, window_bounds = array<i64: 1, 28, 28>}, {pipeline_mode = #tpu.pipeline_mode<synchronous>, transform_indices = @transform_1, window_bounds = array<i64: 3, 28, 160>}, {pipeline_mode = #tpu.pipeline_mode<synchronous>, transform_indices = @transform_2, window_bounds = array<i64: 3, 10, 28>}, {pipeline_mode = #tpu.pipeline_mode<synchronous>, transform_indices = @transform_3, window_bounds = array<i64: 1, 80>}, {pipeline_mode = #tpu.pipeline_mode<synchronous>, transform_indices = @transform_4, window_bounds = array<i64: 3, 80, 32>}, {pipeline_mode = #tpu.pipeline_mode<synchronous>, transform_indices = @transform_5, window_bounds = array<i64: 3, 4, 5>}, {pipeline_mode = #tpu.pipeline_mode<synchronous>, transform_indices = @transform_6, window_bounds = array<i64: 1, 16>}, {pipeline_mode = #tpu.pipeline_mode<synchronous>, transform_indices = @transform_7, window_bounds = array<i64: 3, 16, 80>}, {pipeline_mode = #tpu.pipeline_mode<synchronous>, transform_indices = @transform_8, window_bounds = array<i64: 3, 5, 2>}, {pipeline_mode = #tpu.pipeline_mode<synchronous>, transform_indices = @transform_9, window_bounds = array<i64: 1, 80>}, {pipeline_mode = #tpu.pipeline_mode<synchronous>, transform_indices = @transform_10, window_bounds = array<i64: 5, 80, 120>}, {pipeline_mode = #tpu.pipeline_mode<synchronous>, transform_indices = @transform_11, window_bounds = array<i64: 5, 15, 5>}, {pipeline_mode = #tpu.pipeline_mode<synchronous>, transform_indices = @transform_12, window_bounds = array<i64: 1, 120>}, {pipeline_mode = #tpu.pipeline_mode<synchronous>, transform_indices = @transform_13, window_bounds = array<i64: 2, 120, 28>}, {pipeline_mode = #tpu.pipeline_mode<synchronous>, transform_indices = @transform_14, window_bounds = array<i64: 2, 28, 15>}, {pipeline_mode = #tpu.pipeline_mode<synchronous>, transform_indices = @transform_15, window_bounds = array<i64: 1, 28>}, {transform_indices = @transform_16, window_bounds = array<i64: 1, 28, 28>}]} {
    %c0 = arith.constant 0 : index
    %c0_0 = arith.constant 0 : index
    %c0_1 = arith.constant 0 : index
    %0 = vector.load %arg1[%c0, %c0_0, %c0_1] : memref<1x28x28xf32, #tpu.memory_space<vmem>>, vector<1x28x28xf32>
    %1 = vector.shape_cast %0 : vector<1x28x28xf32> to vector<28x28xf32>
    %c0_2 = arith.constant 0 : index
    %c0_3 = arith.constant 0 : index
    %c0_4 = arith.constant 0 : index
    %2 = vector.load %arg2[%c0_2, %c0_3, %c0_4] : memref<3x28x160xf32, #tpu.memory_space<vmem>>, vector<1x28x160xf32>
    %3 = vector.shape_cast %2 : vector<1x28x160xf32> to vector<28x160xf32>
    %cst = arith.constant dense<0.000000e+00> : vector<28x160xf32>
    %4 = tpu.matmul %1, %3, %cst {dimension_numbers = #tpu.dot_dimension_numbers<[1], [0], [0], [1], [0, 0, 1, 1], [], []>} : vector<28x28xf32>, vector<28x160xf32>, vector<28x160xf32> -> vector<28x160xf32>
    %c0_5 = arith.constant 0 : index
    %c0_6 = arith.constant 0 : index
    %c0_7 = arith.constant 0 : index
    %5 = vector.load %arg3[%c0_5, %c0_6, %c0_7] : memref<3x10x28xf32, #tpu.memory_space<vmem>>, vector<1x10x28xf32>
    %6 = vector.shape_cast %5 : vector<1x10x28xf32> to vector<10x28xf32>
    %cst_8 = arith.constant dense<0.000000e+00> : vector<10x160xf32>
    %7 = tpu.matmul %6, %4, %cst_8 {dimension_numbers = #tpu.dot_dimension_numbers<[1], [0], [0], [1], [0, 0, 1, 1], [], []>} : vector<10x28xf32>, vector<28x160xf32>, vector<10x160xf32> -> vector<10x160xf32>
    %c1 = arith.constant 1 : index
    %c0_9 = arith.constant 0 : index
    %c0_10 = arith.constant 0 : index
    %8 = vector.load %arg2[%c1, %c0_9, %c0_10] : memref<3x28x160xf32, #tpu.memory_space<vmem>>, vector<1x28x160xf32>
    %9 = vector.shape_cast %8 : vector<1x28x160xf32> to vector<28x160xf32>
    %cst_11 = arith.constant dense<0.000000e+00> : vector<28x160xf32>
    %10 = tpu.matmul %1, %9, %cst_11 {dimension_numbers = #tpu.dot_dimension_numbers<[1], [0], [0], [1], [0, 0, 1, 1], [], []>} : vector<28x28xf32>, vector<28x160xf32>, vector<28x160xf32> -> vector<28x160xf32>
    %c1_12 = arith.constant 1 : index
    %c0_13 = arith.constant 0 : index
    %c0_14 = arith.constant 0 : index
    %11 = vector.load %arg3[%c1_12, %c0_13, %c0_14] : memref<3x10x28xf32, #tpu.memory_space<vmem>>, vector<1x10x28xf32>
    %12 = vector.shape_cast %11 : vector<1x10x28xf32> to vector<10x28xf32>
    %cst_15 = arith.constant dense<0.000000e+00> : vector<10x160xf32>
    %13 = tpu.matmul %12, %10, %cst_15 {dimension_numbers = #tpu.dot_dimension_numbers<[1], [0], [0], [1], [0, 0, 1, 1], [], []>} : vector<10x28xf32>, vector<28x160xf32>, vector<10x160xf32> -> vector<10x160xf32>
    %14 = arith.addf %7, %13 : vector<10x160xf32>
    %c2 = arith.constant 2 : index
    %c0_16 = arith.constant 0 : index
    %c0_17 = arith.constant 0 : index
    %15 = vector.load %arg2[%c2, %c0_16, %c0_17] : memref<3x28x160xf32, #tpu.memory_space<vmem>>, vector<1x28x160xf32>
    %16 = vector.shape_cast %15 : vector<1x28x160xf32> to vector<28x160xf32>
    %cst_18 = arith.constant dense<0.000000e+00> : vector<28x160xf32>
    %17 = tpu.matmul %1, %16, %cst_18 {dimension_numbers = #tpu.dot_dimension_numbers<[1], [0], [0], [1], [0, 0, 1, 1], [], []>} : vector<28x28xf32>, vector<28x160xf32>, vector<28x160xf32> -> vector<28x160xf32>
    %c2_19 = arith.constant 2 : index
    %c0_20 = arith.constant 0 : index
    %c0_21 = arith.constant 0 : index
    %18 = vector.load %arg3[%c2_19, %c0_20, %c0_21] : memref<3x10x28xf32, #tpu.memory_space<vmem>>, vector<1x10x28xf32>
    %19 = vector.shape_cast %18 : vector<1x10x28xf32> to vector<10x28xf32>
    %cst_22 = arith.constant dense<0.000000e+00> : vector<10x160xf32>
    %20 = tpu.matmul %19, %17, %cst_22 {dimension_numbers = #tpu.dot_dimension_numbers<[1], [0], [0], [1], [0, 0, 1, 1], [], []>} : vector<10x28xf32>, vector<28x160xf32>, vector<10x160xf32> -> vector<10x160xf32>
    %21 = arith.addf %14, %20 : vector<10x160xf32>
    %22 = vector.extract_strided_slice %21 {offsets = [0, 0], sizes = [5, 80], strides = [1, 1]} : vector<10x160xf32> to vector<5x80xf32>
    %23 = vector.extract_strided_slice %21 {offsets = [0, 80], sizes = [5, 80], strides = [1, 1]} : vector<10x160xf32> to vector<5x80xf32>
    %24 = arith.maximumf %22, %23 : vector<5x80xf32>
    %25 = vector.extract_strided_slice %21 {offsets = [5, 0], sizes = [5, 80], strides = [1, 1]} : vector<10x160xf32> to vector<5x80xf32>
    %26 = vector.extract_strided_slice %21 {offsets = [5, 80], sizes = [5, 80], strides = [1, 1]} : vector<10x160xf32> to vector<5x80xf32>
    %27 = arith.maximumf %25, %26 : vector<5x80xf32>
    %28 = arith.maximumf %24, %27 : vector<5x80xf32>
    %c0_23 = arith.constant 0 : index
    %c0_24 = arith.constant 0 : index
    %29 = vector.load %arg4[%c0_23, %c0_24] : memref<1x80xf32, #tpu.memory_space<vmem>>, vector<1x80xf32>
    %30 = vector.broadcast %29 : vector<1x80xf32> to vector<5x80xf32>
    %31 = arith.addf %28, %30 : vector<5x80xf32>
    %cst_25 = arith.constant 0.000000e+00 : f32
    %32 = vector.broadcast %cst_25 : f32 to vector<5x80xf32>
    %33 = arith.maximumf %31, %32 : vector<5x80xf32>
    %c0_26 = arith.constant 0 : index
    %c0_27 = arith.constant 0 : index
    %c0_28 = arith.constant 0 : index
    %34 = vector.load %arg5[%c0_26, %c0_27, %c0_28] : memref<3x80x32xf32, #tpu.memory_space<vmem>>, vector<1x80x32xf32>
    %35 = vector.shape_cast %34 : vector<1x80x32xf32> to vector<80x32xf32>
    %cst_29 = arith.constant dense<0.000000e+00> : vector<5x32xf32>
    %36 = tpu.matmul %33, %35, %cst_29 {dimension_numbers = #tpu.dot_dimension_numbers<[1], [0], [0], [1], [0, 0, 1, 1], [], []>} : vector<5x80xf32>, vector<80x32xf32>, vector<5x32xf32> -> vector<5x32xf32>
    %c0_30 = arith.constant 0 : index
    %c0_31 = arith.constant 0 : index
    %c0_32 = arith.constant 0 : index
    %37 = vector.load %arg6[%c0_30, %c0_31, %c0_32] : memref<3x4x5xf32, #tpu.memory_space<vmem>>, vector<1x4x5xf32>
    %38 = vector.shape_cast %37 : vector<1x4x5xf32> to vector<4x5xf32>
    %cst_33 = arith.constant dense<0.000000e+00> : vector<4x32xf32>
    %39 = tpu.matmul %38, %36, %cst_33 {dimension_numbers = #tpu.dot_dimension_numbers<[1], [0], [0], [1], [0, 0, 1, 1], [], []>} : vector<4x5xf32>, vector<5x32xf32>, vector<4x32xf32> -> vector<4x32xf32>
    %c1_34 = arith.constant 1 : index
    %c0_35 = arith.constant 0 : index
    %c0_36 = arith.constant 0 : index
    %40 = vector.load %arg5[%c1_34, %c0_35, %c0_36] : memref<3x80x32xf32, #tpu.memory_space<vmem>>, vector<1x80x32xf32>
    %41 = vector.shape_cast %40 : vector<1x80x32xf32> to vector<80x32xf32>
    %cst_37 = arith.constant dense<0.000000e+00> : vector<5x32xf32>
    %42 = tpu.matmul %33, %41, %cst_37 {dimension_numbers = #tpu.dot_dimension_numbers<[1], [0], [0], [1], [0, 0, 1, 1], [], []>} : vector<5x80xf32>, vector<80x32xf32>, vector<5x32xf32> -> vector<5x32xf32>
    %c1_38 = arith.constant 1 : index
    %c0_39 = arith.constant 0 : index
    %c0_40 = arith.constant 0 : index
    %43 = vector.load %arg6[%c1_38, %c0_39, %c0_40] : memref<3x4x5xf32, #tpu.memory_space<vmem>>, vector<1x4x5xf32>
    %44 = vector.shape_cast %43 : vector<1x4x5xf32> to vector<4x5xf32>
    %cst_41 = arith.constant dense<0.000000e+00> : vector<4x32xf32>
    %45 = tpu.matmul %44, %42, %cst_41 {dimension_numbers = #tpu.dot_dimension_numbers<[1], [0], [0], [1], [0, 0, 1, 1], [], []>} : vector<4x5xf32>, vector<5x32xf32>, vector<4x32xf32> -> vector<4x32xf32>
    %46 = arith.addf %39, %45 : vector<4x32xf32>
    %c2_42 = arith.constant 2 : index
    %c0_43 = arith.constant 0 : index
    %c0_44 = arith.constant 0 : index
    %47 = vector.load %arg5[%c2_42, %c0_43, %c0_44] : memref<3x80x32xf32, #tpu.memory_space<vmem>>, vector<1x80x32xf32>
    %48 = vector.shape_cast %47 : vector<1x80x32xf32> to vector<80x32xf32>
    %cst_45 = arith.constant dense<0.000000e+00> : vector<5x32xf32>
    %49 = tpu.matmul %33, %48, %cst_45 {dimension_numbers = #tpu.dot_dimension_numbers<[1], [0], [0], [1], [0, 0, 1, 1], [], []>} : vector<5x80xf32>, vector<80x32xf32>, vector<5x32xf32> -> vector<5x32xf32>
    %c2_46 = arith.constant 2 : index
    %c0_47 = arith.constant 0 : index
    %c0_48 = arith.constant 0 : index
    %50 = vector.load %arg6[%c2_46, %c0_47, %c0_48] : memref<3x4x5xf32, #tpu.memory_space<vmem>>, vector<1x4x5xf32>
    %51 = vector.shape_cast %50 : vector<1x4x5xf32> to vector<4x5xf32>
    %cst_49 = arith.constant dense<0.000000e+00> : vector<4x32xf32>
    %52 = tpu.matmul %51, %49, %cst_49 {dimension_numbers = #tpu.dot_dimension_numbers<[1], [0], [0], [1], [0, 0, 1, 1], [], []>} : vector<4x5xf32>, vector<5x32xf32>, vector<4x32xf32> -> vector<4x32xf32>
    %53 = arith.addf %46, %52 : vector<4x32xf32>
    %54 = vector.extract_strided_slice %53 {offsets = [0, 0], sizes = [2, 16], strides = [1, 1]} : vector<4x32xf32> to vector<2x16xf32>
    %55 = vector.extract_strided_slice %53 {offsets = [0, 16], sizes = [2, 16], strides = [1, 1]} : vector<4x32xf32> to vector<2x16xf32>
    %56 = arith.maximumf %54, %55 : vector<2x16xf32>
    %57 = vector.extract_strided_slice %53 {offsets = [2, 0], sizes = [2, 16], strides = [1, 1]} : vector<4x32xf32> to vector<2x16xf32>
    %58 = vector.extract_strided_slice %53 {offsets = [2, 16], sizes = [2, 16], strides = [1, 1]} : vector<4x32xf32> to vector<2x16xf32>
    %59 = arith.maximumf %57, %58 : vector<2x16xf32>
    %60 = arith.maximumf %56, %59 : vector<2x16xf32>
    %c0_50 = arith.constant 0 : index
    %c0_51 = arith.constant 0 : index
    %61 = vector.load %arg7[%c0_50, %c0_51] : memref<1x16xf32, #tpu.memory_space<vmem>>, vector<1x16xf32>
    %62 = vector.broadcast %61 : vector<1x16xf32> to vector<2x16xf32>
    %63 = arith.addf %60, %62 : vector<2x16xf32>
    %cst_52 = arith.constant 0.000000e+00 : f32
    %64 = vector.broadcast %cst_52 : f32 to vector<2x16xf32>
    %65 = arith.maximumf %63, %64 : vector<2x16xf32>
    %c0_53 = arith.constant 0 : index
    %c0_54 = arith.constant 0 : index
    %c0_55 = arith.constant 0 : index
    %66 = vector.load %arg8[%c0_53, %c0_54, %c0_55] : memref<3x16x80xf32, #tpu.memory_space<vmem>>, vector<1x16x80xf32>
    %67 = vector.shape_cast %66 : vector<1x16x80xf32> to vector<16x80xf32>
    %cst_56 = arith.constant dense<0.000000e+00> : vector<2x80xf32>
    %68 = tpu.matmul %65, %67, %cst_56 {dimension_numbers = #tpu.dot_dimension_numbers<[1], [0], [0], [1], [0, 0, 1, 1], [], []>} : vector<2x16xf32>, vector<16x80xf32>, vector<2x80xf32> -> vector<2x80xf32>
    %c0_57 = arith.constant 0 : index
    %c0_58 = arith.constant 0 : index
    %c0_59 = arith.constant 0 : index
    %69 = vector.load %arg9[%c0_57, %c0_58, %c0_59] : memref<3x5x2xf32, #tpu.memory_space<vmem>>, vector<1x5x2xf32>
    %70 = vector.shape_cast %69 : vector<1x5x2xf32> to vector<5x2xf32>
    %cst_60 = arith.constant dense<0.000000e+00> : vector<5x80xf32>
    %71 = tpu.matmul %70, %68, %cst_60 {dimension_numbers = #tpu.dot_dimension_numbers<[1], [0], [0], [1], [0, 0, 1, 1], [], []>} : vector<5x2xf32>, vector<2x80xf32>, vector<5x80xf32> -> vector<5x80xf32>
    %c1_61 = arith.constant 1 : index
    %c0_62 = arith.constant 0 : index
    %c0_63 = arith.constant 0 : index
    %72 = vector.load %arg8[%c1_61, %c0_62, %c0_63] : memref<3x16x80xf32, #tpu.memory_space<vmem>>, vector<1x16x80xf32>
    %73 = vector.shape_cast %72 : vector<1x16x80xf32> to vector<16x80xf32>
    %cst_64 = arith.constant dense<0.000000e+00> : vector<2x80xf32>
    %74 = tpu.matmul %65, %73, %cst_64 {dimension_numbers = #tpu.dot_dimension_numbers<[1], [0], [0], [1], [0, 0, 1, 1], [], []>} : vector<2x16xf32>, vector<16x80xf32>, vector<2x80xf32> -> vector<2x80xf32>
    %c1_65 = arith.constant 1 : index
    %c0_66 = arith.constant 0 : index
    %c0_67 = arith.constant 0 : index
    %75 = vector.load %arg9[%c1_65, %c0_66, %c0_67] : memref<3x5x2xf32, #tpu.memory_space<vmem>>, vector<1x5x2xf32>
    %76 = vector.shape_cast %75 : vector<1x5x2xf32> to vector<5x2xf32>
    %cst_68 = arith.constant dense<0.000000e+00> : vector<5x80xf32>
    %77 = tpu.matmul %76, %74, %cst_68 {dimension_numbers = #tpu.dot_dimension_numbers<[1], [0], [0], [1], [0, 0, 1, 1], [], []>} : vector<5x2xf32>, vector<2x80xf32>, vector<5x80xf32> -> vector<5x80xf32>
    %78 = arith.addf %71, %77 : vector<5x80xf32>
    %c2_69 = arith.constant 2 : index
    %c0_70 = arith.constant 0 : index
    %c0_71 = arith.constant 0 : index
    %79 = vector.load %arg8[%c2_69, %c0_70, %c0_71] : memref<3x16x80xf32, #tpu.memory_space<vmem>>, vector<1x16x80xf32>
    %80 = vector.shape_cast %79 : vector<1x16x80xf32> to vector<16x80xf32>
    %cst_72 = arith.constant dense<0.000000e+00> : vector<2x80xf32>
    %81 = tpu.matmul %65, %80, %cst_72 {dimension_numbers = #tpu.dot_dimension_numbers<[1], [0], [0], [1], [0, 0, 1, 1], [], []>} : vector<2x16xf32>, vector<16x80xf32>, vector<2x80xf32> -> vector<2x80xf32>
    %c2_73 = arith.constant 2 : index
    %c0_74 = arith.constant 0 : index
    %c0_75 = arith.constant 0 : index
    %82 = vector.load %arg9[%c2_73, %c0_74, %c0_75] : memref<3x5x2xf32, #tpu.memory_space<vmem>>, vector<1x5x2xf32>
    %83 = vector.shape_cast %82 : vector<1x5x2xf32> to vector<5x2xf32>
    %cst_76 = arith.constant dense<0.000000e+00> : vector<5x80xf32>
    %84 = tpu.matmul %83, %81, %cst_76 {dimension_numbers = #tpu.dot_dimension_numbers<[1], [0], [0], [1], [0, 0, 1, 1], [], []>} : vector<5x2xf32>, vector<2x80xf32>, vector<5x80xf32> -> vector<5x80xf32>
    %85 = arith.addf %78, %84 : vector<5x80xf32>
    %c0_77 = arith.constant 0 : index
    %c0_78 = arith.constant 0 : index
    %86 = vector.load %arg10[%c0_77, %c0_78] : memref<1x80xf32, #tpu.memory_space<vmem>>, vector<1x80xf32>
    %87 = vector.broadcast %86 : vector<1x80xf32> to vector<5x80xf32>
    %88 = arith.addf %85, %87 : vector<5x80xf32>
    %cst_79 = arith.constant 0.000000e+00 : f32
    %89 = vector.broadcast %cst_79 : f32 to vector<5x80xf32>
    %90 = arith.maximumf %88, %89 : vector<5x80xf32>
    %c0_80 = arith.constant 0 : index
    %c0_81 = arith.constant 0 : index
    %c0_82 = arith.constant 0 : index
    %91 = vector.load %arg11[%c0_80, %c0_81, %c0_82] : memref<5x80x120xf32, #tpu.memory_space<vmem>>, vector<1x80x120xf32>
    %92 = vector.shape_cast %91 : vector<1x80x120xf32> to vector<80x120xf32>
    %cst_83 = arith.constant dense<0.000000e+00> : vector<5x120xf32>
    %93 = tpu.matmul %90, %92, %cst_83 {dimension_numbers = #tpu.dot_dimension_numbers<[1], [0], [0], [1], [0, 0, 1, 1], [], []>} : vector<5x80xf32>, vector<80x120xf32>, vector<5x120xf32> -> vector<5x120xf32>
    %c0_84 = arith.constant 0 : index
    %c0_85 = arith.constant 0 : index
    %c0_86 = arith.constant 0 : index
    %94 = vector.load %arg12[%c0_84, %c0_85, %c0_86] : memref<5x15x5xf32, #tpu.memory_space<vmem>>, vector<1x15x5xf32>
    %95 = vector.shape_cast %94 : vector<1x15x5xf32> to vector<15x5xf32>
    %cst_87 = arith.constant dense<0.000000e+00> : vector<15x120xf32>
    %96 = tpu.matmul %95, %93, %cst_87 {dimension_numbers = #tpu.dot_dimension_numbers<[1], [0], [0], [1], [0, 0, 1, 1], [], []>} : vector<15x5xf32>, vector<5x120xf32>, vector<15x120xf32> -> vector<15x120xf32>
    %c1_88 = arith.constant 1 : index
    %c0_89 = arith.constant 0 : index
    %c0_90 = arith.constant 0 : index
    %97 = vector.load %arg11[%c1_88, %c0_89, %c0_90] : memref<5x80x120xf32, #tpu.memory_space<vmem>>, vector<1x80x120xf32>
    %98 = vector.shape_cast %97 : vector<1x80x120xf32> to vector<80x120xf32>
    %cst_91 = arith.constant dense<0.000000e+00> : vector<5x120xf32>
    %99 = tpu.matmul %90, %98, %cst_91 {dimension_numbers = #tpu.dot_dimension_numbers<[1], [0], [0], [1], [0, 0, 1, 1], [], []>} : vector<5x80xf32>, vector<80x120xf32>, vector<5x120xf32> -> vector<5x120xf32>
    %c1_92 = arith.constant 1 : index
    %c0_93 = arith.constant 0 : index
    %c0_94 = arith.constant 0 : index
    %100 = vector.load %arg12[%c1_92, %c0_93, %c0_94] : memref<5x15x5xf32, #tpu.memory_space<vmem>>, vector<1x15x5xf32>
    %101 = vector.shape_cast %100 : vector<1x15x5xf32> to vector<15x5xf32>
    %cst_95 = arith.constant dense<0.000000e+00> : vector<15x120xf32>
    %102 = tpu.matmul %101, %99, %cst_95 {dimension_numbers = #tpu.dot_dimension_numbers<[1], [0], [0], [1], [0, 0, 1, 1], [], []>} : vector<15x5xf32>, vector<5x120xf32>, vector<15x120xf32> -> vector<15x120xf32>
    %103 = arith.addf %96, %102 : vector<15x120xf32>
    %c2_96 = arith.constant 2 : index
    %c0_97 = arith.constant 0 : index
    %c0_98 = arith.constant 0 : index
    %104 = vector.load %arg11[%c2_96, %c0_97, %c0_98] : memref<5x80x120xf32, #tpu.memory_space<vmem>>, vector<1x80x120xf32>
    %105 = vector.shape_cast %104 : vector<1x80x120xf32> to vector<80x120xf32>
    %cst_99 = arith.constant dense<0.000000e+00> : vector<5x120xf32>
    %106 = tpu.matmul %90, %105, %cst_99 {dimension_numbers = #tpu.dot_dimension_numbers<[1], [0], [0], [1], [0, 0, 1, 1], [], []>} : vector<5x80xf32>, vector<80x120xf32>, vector<5x120xf32> -> vector<5x120xf32>
    %c2_100 = arith.constant 2 : index
    %c0_101 = arith.constant 0 : index
    %c0_102 = arith.constant 0 : index
    %107 = vector.load %arg12[%c2_100, %c0_101, %c0_102] : memref<5x15x5xf32, #tpu.memory_space<vmem>>, vector<1x15x5xf32>
    %108 = vector.shape_cast %107 : vector<1x15x5xf32> to vector<15x5xf32>
    %cst_103 = arith.constant dense<0.000000e+00> : vector<15x120xf32>
    %109 = tpu.matmul %108, %106, %cst_103 {dimension_numbers = #tpu.dot_dimension_numbers<[1], [0], [0], [1], [0, 0, 1, 1], [], []>} : vector<15x5xf32>, vector<5x120xf32>, vector<15x120xf32> -> vector<15x120xf32>
    %110 = arith.addf %103, %109 : vector<15x120xf32>
    %c3 = arith.constant 3 : index
    %c0_104 = arith.constant 0 : index
    %c0_105 = arith.constant 0 : index
    %111 = vector.load %arg11[%c3, %c0_104, %c0_105] : memref<5x80x120xf32, #tpu.memory_space<vmem>>, vector<1x80x120xf32>
    %112 = vector.shape_cast %111 : vector<1x80x120xf32> to vector<80x120xf32>
    %cst_106 = arith.constant dense<0.000000e+00> : vector<5x120xf32>
    %113 = tpu.matmul %90, %112, %cst_106 {dimension_numbers = #tpu.dot_dimension_numbers<[1], [0], [0], [1], [0, 0, 1, 1], [], []>} : vector<5x80xf32>, vector<80x120xf32>, vector<5x120xf32> -> vector<5x120xf32>
    %c3_107 = arith.constant 3 : index
    %c0_108 = arith.constant 0 : index
    %c0_109 = arith.constant 0 : index
    %114 = vector.load %arg12[%c3_107, %c0_108, %c0_109] : memref<5x15x5xf32, #tpu.memory_space<vmem>>, vector<1x15x5xf32>
    %115 = vector.shape_cast %114 : vector<1x15x5xf32> to vector<15x5xf32>
    %cst_110 = arith.constant dense<0.000000e+00> : vector<15x120xf32>
    %116 = tpu.matmul %115, %113, %cst_110 {dimension_numbers = #tpu.dot_dimension_numbers<[1], [0], [0], [1], [0, 0, 1, 1], [], []>} : vector<15x5xf32>, vector<5x120xf32>, vector<15x120xf32> -> vector<15x120xf32>
    %117 = arith.addf %110, %116 : vector<15x120xf32>
    %c4 = arith.constant 4 : index
    %c0_111 = arith.constant 0 : index
    %c0_112 = arith.constant 0 : index
    %118 = vector.load %arg11[%c4, %c0_111, %c0_112] : memref<5x80x120xf32, #tpu.memory_space<vmem>>, vector<1x80x120xf32>
    %119 = vector.shape_cast %118 : vector<1x80x120xf32> to vector<80x120xf32>
    %cst_113 = arith.constant dense<0.000000e+00> : vector<5x120xf32>
    %120 = tpu.matmul %90, %119, %cst_113 {dimension_numbers = #tpu.dot_dimension_numbers<[1], [0], [0], [1], [0, 0, 1, 1], [], []>} : vector<5x80xf32>, vector<80x120xf32>, vector<5x120xf32> -> vector<5x120xf32>
    %c4_114 = arith.constant 4 : index
    %c0_115 = arith.constant 0 : index
    %c0_116 = arith.constant 0 : index
    %121 = vector.load %arg12[%c4_114, %c0_115, %c0_116] : memref<5x15x5xf32, #tpu.memory_space<vmem>>, vector<1x15x5xf32>
    %122 = vector.shape_cast %121 : vector<1x15x5xf32> to vector<15x5xf32>
    %cst_117 = arith.constant dense<0.000000e+00> : vector<15x120xf32>
    %123 = tpu.matmul %122, %120, %cst_117 {dimension_numbers = #tpu.dot_dimension_numbers<[1], [0], [0], [1], [0, 0, 1, 1], [], []>} : vector<15x5xf32>, vector<5x120xf32>, vector<15x120xf32> -> vector<15x120xf32>
    %124 = arith.addf %117, %123 : vector<15x120xf32>
    %c0_118 = arith.constant 0 : index
    %c0_119 = arith.constant 0 : index
    %125 = vector.load %arg13[%c0_118, %c0_119] : memref<1x120xf32, #tpu.memory_space<vmem>>, vector<1x120xf32>
    %126 = vector.broadcast %125 : vector<1x120xf32> to vector<15x120xf32>
    %127 = arith.addf %124, %126 : vector<15x120xf32>
    %cst_120 = arith.constant 0.000000e+00 : f32
    %128 = vector.broadcast %cst_120 : f32 to vector<15x120xf32>
    %129 = arith.maximumf %127, %128 : vector<15x120xf32>
    %c0_121 = arith.constant 0 : index
    %c0_122 = arith.constant 0 : index
    %c0_123 = arith.constant 0 : index
    %130 = vector.load %arg14[%c0_121, %c0_122, %c0_123] : memref<2x120x28xf32, #tpu.memory_space<vmem>>, vector<1x120x28xf32>
    %131 = vector.shape_cast %130 : vector<1x120x28xf32> to vector<120x28xf32>
    %cst_124 = arith.constant dense<0.000000e+00> : vector<15x28xf32>
    %132 = tpu.matmul %129, %131, %cst_124 {dimension_numbers = #tpu.dot_dimension_numbers<[1], [0], [0], [1], [0, 0, 1, 1], [], []>} : vector<15x120xf32>, vector<120x28xf32>, vector<15x28xf32> -> vector<15x28xf32>
    %c0_125 = arith.constant 0 : index
    %c0_126 = arith.constant 0 : index
    %c0_127 = arith.constant 0 : index
    %133 = vector.load %arg15[%c0_125, %c0_126, %c0_127] : memref<2x28x15xf32, #tpu.memory_space<vmem>>, vector<1x28x15xf32>
    %134 = vector.shape_cast %133 : vector<1x28x15xf32> to vector<28x15xf32>
    %cst_128 = arith.constant dense<0.000000e+00> : vector<28x28xf32>
    %135 = tpu.matmul %134, %132, %cst_128 {dimension_numbers = #tpu.dot_dimension_numbers<[1], [0], [0], [1], [0, 0, 1, 1], [], []>} : vector<28x15xf32>, vector<15x28xf32>, vector<28x28xf32> -> vector<28x28xf32>
    %c1_129 = arith.constant 1 : index
    %c0_130 = arith.constant 0 : index
    %c0_131 = arith.constant 0 : index
    %136 = vector.load %arg14[%c1_129, %c0_130, %c0_131] : memref<2x120x28xf32, #tpu.memory_space<vmem>>, vector<1x120x28xf32>
    %137 = vector.shape_cast %136 : vector<1x120x28xf32> to vector<120x28xf32>
    %cst_132 = arith.constant dense<0.000000e+00> : vector<15x28xf32>
    %138 = tpu.matmul %129, %137, %cst_132 {dimension_numbers = #tpu.dot_dimension_numbers<[1], [0], [0], [1], [0, 0, 1, 1], [], []>} : vector<15x120xf32>, vector<120x28xf32>, vector<15x28xf32> -> vector<15x28xf32>
    %c1_133 = arith.constant 1 : index
    %c0_134 = arith.constant 0 : index
    %c0_135 = arith.constant 0 : index
    %139 = vector.load %arg15[%c1_133, %c0_134, %c0_135] : memref<2x28x15xf32, #tpu.memory_space<vmem>>, vector<1x28x15xf32>
    %140 = vector.shape_cast %139 : vector<1x28x15xf32> to vector<28x15xf32>
    %cst_136 = arith.constant dense<0.000000e+00> : vector<28x28xf32>
    %141 = tpu.matmul %140, %138, %cst_136 {dimension_numbers = #tpu.dot_dimension_numbers<[1], [0], [0], [1], [0, 0, 1, 1], [], []>} : vector<28x15xf32>, vector<15x28xf32>, vector<28x28xf32> -> vector<28x28xf32>
    %142 = arith.addf %135, %141 : vector<28x28xf32>
    %c0_137 = arith.constant 0 : index
    %c0_138 = arith.constant 0 : index
    %143 = vector.load %arg16[%c0_137, %c0_138] : memref<1x28xf32, #tpu.memory_space<vmem>>, vector<1x28xf32>
    %144 = vector.broadcast %143 : vector<1x28xf32> to vector<28x28xf32>
    %145 = arith.addf %142, %144 : vector<28x28xf32>
    %146 = math.tanh %145 : vector<28x28xf32>
    %c0_139 = arith.constant 0 : index
    %c0_140 = arith.constant 0 : index
    %c0_141 = arith.constant 0 : index
    %147 = vector.load %arg17[%c0_139, %c0_140, %c0_141] : memref<1x28x28xf32, #tpu.memory_space<vmem>>, vector<1x28x28xf32>
    %148 = vector.shape_cast %147 : vector<1x28x28xf32> to vector<28x28xf32>
    %149 = vector.shape_cast %146 : vector<28x28xf32> to vector<1x28x28xf32>
    tpu.vector_store %arg17[%c0_139, %c0_140, %c0_141], %149 {strides = array<i32>} : memref<1x28x28xf32, #tpu.memory_space<vmem>>, vector<1x28x28xf32>,
    return
  }
  func.func @transform_0(%arg0: i32) -> (i32, i32, i32) {
    %c0_i32 = arith.constant 0 : i32
    %c0_i32_0 = arith.constant 0 : i32
    %c0_i32_1 = arith.constant 0 : i32
    return %arg0, %c0_i32, %c0_i32_0 : i32, i32, i32
  }
  func.func @transform_1(%arg0: i32) -> (i32, i32, i32) {
    %c0_i32 = arith.constant 0 : i32
    %c0_i32_0 = arith.constant 0 : i32
    %c0_i32_1 = arith.constant 0 : i32
    %c0_i32_2 = arith.constant 0 : i32
    return %c0_i32, %c0_i32_0, %c0_i32_1 : i32, i32, i32
  }
  func.func @transform_2(%arg0: i32) -> (i32, i32, i32) {
    %c0_i32 = arith.constant 0 : i32
    %c0_i32_0 = arith.constant 0 : i32
    %c0_i32_1 = arith.constant 0 : i32
    %c0_i32_2 = arith.constant 0 : i32
    return %c0_i32, %c0_i32_0, %c0_i32_1 : i32, i32, i32
  }
  func.func @transform_3(%arg0: i32) -> (i32, i32) {
    %c0_i32 = arith.constant 0 : i32
    %c0_i32_0 = arith.constant 0 : i32
    %c0_i32_1 = arith.constant 0 : i32
    return %c0_i32, %c0_i32_0 : i32, i32
  }
  func.func @transform_4(%arg0: i32) -> (i32, i32, i32) {
    %c0_i32 = arith.constant 0 : i32
    %c0_i32_0 = arith.constant 0 : i32
    %c0_i32_1 = arith.constant 0 : i32
    %c0_i32_2 = arith.constant 0 : i32
    return %c0_i32, %c0_i32_0, %c0_i32_1 : i32, i32, i32
  }
  func.func @transform_5(%arg0: i32) -> (i32, i32, i32) {
    %c0_i32 = arith.constant 0 : i32
    %c0_i32_0 = arith.constant 0 : i32
    %c0_i32_1 = arith.constant 0 : i32
    %c0_i32_2 = arith.constant 0 : i32
    return %c0_i32, %c0_i32_0, %c0_i32_1 : i32, i32, i32
  }
  func.func @transform_6(%arg0: i32) -> (i32, i32) {
    %c0_i32 = arith.constant 0 : i32
    %c0_i32_0 = arith.constant 0 : i32
    %c0_i32_1 = arith.constant 0 : i32
    return %c0_i32, %c0_i32_0 : i32, i32
  }
  func.func @transform_7(%arg0: i32) -> (i32, i32, i32) {
    %c0_i32 = arith.constant 0 : i32
    %c0_i32_0 = arith.constant 0 : i32
    %c0_i32_1 = arith.constant 0 : i32
    %c0_i32_2 = arith.constant 0 : i32
    return %c0_i32, %c0_i32_0, %c0_i32_1 : i32, i32, i32
  }
  func.func @transform_8(%arg0: i32) -> (i32, i32, i32) {
    %c0_i32 = arith.constant 0 : i32
    %c0_i32_0 = arith.constant 0 : i32
    %c0_i32_1 = arith.constant 0 : i32
    %c0_i32_2 = arith.constant 0 : i32
    return %c0_i32, %c0_i32_0, %c0_i32_1 : i32, i32, i32
  }
  func.func @transform_9(%arg0: i32) -> (i32, i32) {
    %c0_i32 = arith.constant 0 : i32
    %c0_i32_0 = arith.constant 0 : i32
    %c0_i32_1 = arith.constant 0 : i32
    return %c0_i32, %c0_i32_0 : i32, i32
  }
  func.func @transform_10(%arg0: i32) -> (i32, i32, i32) {
    %c0_i32 = arith.constant 0 : i32
    %c0_i32_0 = arith.constant 0 : i32
    %c0_i32_1 = arith.constant 0 : i32
    %c0_i32_2 = arith.constant 0 : i32
    return %c0_i32, %c0_i32_0, %c0_i32_1 : i32, i32, i32
  }
  func.func @transform_11(%arg0: i32) -> (i32, i32, i32) {
    %c0_i32 = arith.constant 0 : i32
    %c0_i32_0 = arith.constant 0 : i32
    %c0_i32_1 = arith.constant 0 : i32
    %c0_i32_2 = arith.constant 0 : i32
    return %c0_i32, %c0_i32_0, %c0_i32_1 : i32, i32, i32
  }
  func.func @transform_12(%arg0: i32) -> (i32, i32) {
    %c0_i32 = arith.constant 0 : i32
    %c0_i32_0 = arith.constant 0 : i32
    %c0_i32_1 = arith.constant 0 : i32
    return %c0_i32, %c0_i32_0 : i32, i32
  }
  func.func @transform_13(%arg0: i32) -> (i32, i32, i32) {
    %c0_i32 = arith.constant 0 : i32
    %c0_i32_0 = arith.constant 0 : i32
    %c0_i32_1 = arith.constant 0 : i32
    %c0_i32_2 = arith.constant 0 : i32
    return %c0_i32, %c0_i32_0, %c0_i32_1 : i32, i32, i32
  }
  func.func @transform_14(%arg0: i32) -> (i32, i32, i32) {
    %c0_i32 = arith.constant 0 : i32
    %c0_i32_0 = arith.constant 0 : i32
    %c0_i32_1 = arith.constant 0 : i32
    %c0_i32_2 = arith.constant 0 : i32
    return %c0_i32, %c0_i32_0, %c0_i32_1 : i32, i32, i32
  }
  func.func @transform_15(%arg0: i32) -> (i32, i32) {
    %c0_i32 = arith.constant 0 : i32
    %c0_i32_0 = arith.constant 0 : i32
    %c0_i32_1 = arith.constant 0 : i32
    return %c0_i32, %c0_i32_0 : i32, i32
  }
  func.func @transform_16(%arg0: i32) -> (i32, i32, i32) {
    %c0_i32 = arith.constant 0 : i32
    %c0_i32_0 = arith.constant 0 : i32
    %c0_i32_1 = arith.constant 0 : i32
    return %arg0, %c0_i32, %c0_i32_0 : i32, i32, i32
  }
}

</mosaic_0001>

<bundles_post_ra>
// kernel: _lambda_.1
= control target key start
LH: loop header
LB: loop body
LE: loop exit
PB: predicated region body
PF: predicated region fallthrough
CT: control target
= control target key end

     0   :  { %s4313_s21 = smov 0   ;;  %s5130_s0 = inlined_call_operand.vmem [shape: f32[2,28,28], index: 0, kind: input, shape index: {}]   ;;  %s5131_s1 = inlined_call_operand.vmem [shape: f32[3,28,160], index: 1, kind: input, shape index: {}]   ;;  %s5132_s2 = inlined_call_operand.vmem [shape: f32[3,10,28], index: 2, kind: input, shape index: {}]   ;;  %s5133_s3 = inlined_call_operand.vmem [shape: f32[1,80], index: 3, kind: input, shape index: {}]   ;;  %s5134_s4 = inlined_call_operand.vmem [shape: f32[3,80,32], index: 4, kind: input, shape index: {}]   ;;  %s5135_s5 = inlined_call_operand.vmem [shape: f32[3,4,5], index: 5, kind: input, shape index: {}]   ;;  %s5136_s6 = inlined_call_operand.vmem [shape: f32[1,16], index: 6, kind: input, shape index: {}]   ;;  %s5137_s7 = inlined_call_operand.vmem [shape: f32[3,16,80], index: 7, kind: input, shape index: {}]   ;;  %s5138_s8 = inlined_call_operand.vmem [shape: f32[3,5,2], index: 8, kind: input, shape index: {}]   ;;  %s5139_s9 = inlined_call_operand.vmem [shape: f32[1,80], index: 9, kind: input, shape index: {}]   ;;  %s5140_s10 = inlined_call_operand.vmem [shape: f32[5,80,120], index: 10, kind: input, shape index: {}]   ;;  %s5141_s11 = inlined_call_operand.vmem [shape: f32[5,15,5], index: 11, kind: input, shape index: {}]   ;;  %s5142_s12 = inlined_call_operand.vmem [shape: f32[1,120], index: 12, kind: input, shape index: {}]   ;;  %s5143_s13 = inlined_call_operand.vmem [shape: f32[2,120,28], index: 13, kind: input, shape index: {}]   ;;  %s5144_s14 = inlined_call_operand.vmem [shape: f32[2,28,15], index: 14, kind: input, shape index: {}]   ;;  %s5145_s15 = inlined_call_operand.vmem [shape: f32[1,28], index: 15, kind: input, shape index: {}]   ;;  %s5146_s16 = inlined_call_operand.vmem [shape: f32[2,28,28], index: 16, kind: output, shape index: {}]  }
   0x1   :  { %5147 = sst [smem:[#allocation2_spill]] %s5130_s0 }
   0x2 LB: > { %s3465_s22 = sadd.s32 4294967295, %s4222_s21   ;;  %p3469_p0 = scmp.ge.s32.totalorder %s4222_s21, 1  ;;  %s4222_s21 = sphi %s4313_s21, %s26_s21  }
   0x3   : > { %p462_p1 = scmp.lt.s32.totalorder %s4222_s21, 3 }
   0x5   : > { %p463_p2 = pnand %p3469_p0, %p462_p1 }
   0x6   : > { %p512_p3 = scmp.lt.s32.totalorder (!%p463_p2), %s3465_s22, 1  ;;  %s5148_s28 = sld [smem:[#allocation2_spill]] (!%p463_p2) }
   0x7   : > { %466 = sbr.rel (%p463_p2) target bundleno = 3388 (0xd3c), region = 84  ;;  %s4225_s19 = smov (!%p463_p2), 48  }
   0xc   : > { %vm547_vm0 = vcmask 1043456   ;;  %v3487_v0 = vld [vmem:[%s5131_s1 + $0x78] sm:$0xf]  ;;  %v3486_v1 = vld [vmem:[%s5131_s1 + $0x70] sm:$0xf]  ;;  %v3485_v2 = vld [vmem:[%s5131_s1 + $0x68] sm:$0xff] }
   0xd   : > { %3488 = vmatprep.subr.msk.mxu1 %vm547_vm0, %v3487_v0  ;;  %v3484_v3 = vld [vmem:[%s5131_s1 + $0x60] sm:$0xff]  ;;  %v533_v4 = vld [vmem:[%s5131_s1 + $0x38] sm:$0xf]  ;;  %v532_v6 = vld [vmem:[%s5131_s1 + $0x30] sm:$0xf]  ;;  %s5150_s22 = smov (!%p512_p3, %s3465_s22), 1 }
   0xe   : > { %3489 = vmatpush1.msk.msra.mxu1 %vm547_vm0, %v3486_v1  ;;  %3474 = vmatprep.subr.msk.mxu0 %vm547_vm0, %v533_v4  ;;  %v3483_v5 = vld [vmem:[%s5131_s1 + $0x58] sm:$0xff]  ;;  %v531_v7 = vld [vmem:[%s5131_s1 + $0x28] sm:$0xff]  ;;  %v3482_v8 = vld [vmem:[%s5131_s1 + $0x50] sm:$0xff]  ;;  %s3678_s23 = sshll.u32 %s5150_s22, 5  ;;  %v4224_v14 = vmov 0.0   ;;  %vm534_vm1 = vcmask 228352  }
   0xf   : > { %686 = vmatprep.subr.mxu1 %v3485_v2  ;;  %3475 = vmatpush1.msk.msra.mxu0 %vm547_vm0, %v532_v6  ;;  %v530_v9 = vld [vmem:[%s5131_s1 + $0x20] sm:$0xff]  ;;  %v3481_v10 = vld [vmem:[%s5131_s1 + $0x48] sm:$0xff]  ;;  %v529_v11 = vld [vmem:[%s5131_s1 + $0x18] sm:$0xff]  ;;  %s516_s29 = scalar_lea.vmem %s5148_s28, %s3678_s23  ;;  %vm4226_vm2 = vmmov 0   ;;  %vm1136_vm3 = vcmask 392192   ;;  %vm1151_vm4 = vcmask 1042432   ;;  %s521_s17 = scalar_lea.vmem %s5146_s16, %s3678_s23 }
  0x10   : > { %687 = vmatpush1.msra.mxu1 %v3484_v3  ;;  %580 = vmatprep.subr.mxu0 %v531_v7  ;;  %v3480_v12 = vld [vmem:[%s5131_s1 + $0x40] sm:$0xff]  ;;  %v528_v13 = vld [vmem:[%s5131_s1 + $0x10] sm:$0xff]  ;;  %v527_v15 = vld [vmem:[%s5131_s1 + $0x8] sm:$0xff]  ;;  %vm1176_vm5 = vcmask 654336   ;;  %vm1338_vm6 = vcmask 1044480   ;;  %vm1334_vm7 = vcmask 39936  }
  0x11   : > { %688 = vmatprep.subr.mxu1 %v3483_v5  ;;  %581 = vmatpush1.msra.mxu0 %v530_v9  ;;  %v4379_v16 = vld [vmem:[%s516_s29] sm:$0xff]  ;;  %v4387_v18 = vld [vmem:[%s516_s29 + $0x8] sm:$0xff]  ;;  %v4396_v19 = vld [vmem:[%s516_s29 + $0x10] sm:$0xff]  ;;  %vm1668_vm8 = vcmask 130048   ;;  %vm1822_vm9 = vcmask 1041408   ;;  %vm1818_vm10 = vcmask 15360  }
  0x12   : > { %689 = vmatpush1.msra.mxu1 %v3482_v8  ;;  %724 = vmatprep.mubr.f32.mxu1 %v4224_v14  ;;  %v526_v17 = vld [vmem:[%s5131_s1] sm:$0xff]  ;;  %v4404_v20 = vld [vmem:[%s516_s29 + $0x18] sm:$0xf]  ;;  %v3494_v37 = vld [vmem:[%s5132_s2 + $0x10] sm:$0xff]  ;;  %vm3006_vm11 = vcmask 982016   ;;  %vm3188_vm12 = vcmask 121856  }
  0x13   : > { %690 = vmatprep.subr.mxu1 %v3481_v10  ;;  %582 = vmatprep.subr.mxu0 %v529_v11  ;;  %v3511_v38 = vld [vmem:[%s5131_s1 + $0xb8] sm:$0xf]  ;;  %v3510_v39 = vld [vmem:[%s5131_s1 + $0xb0] sm:$0xf]  ;;  %v3509_v40 = vld [vmem:[%s5131_s1 + $0xa8] sm:$0xff]  ;;  %vm3201_vm13 = vcmask 1046528  }
  0x14   : > { %691 = vmatpush1.msra.mxu1 %v3480_v12  ;;  %583 = vmatpush1.msra.mxu0 %v528_v13  ;;  %v3508_v41 = vld [vmem:[%s5131_s1 + $0xa0] sm:$0xff]  ;;  %v3495_v42 = vld [vmem:[%s5132_s2 + $0x18] sm:$0x3]  ;;  %v3506_v45 = vld [vmem:[%s5131_s1 + $0x90] sm:$0xff]  ;;  %vm3408_vm14 = vcmask 224256  }
  0x15   : > { %3490 = vmatmul.mubr.msk.f32.vlgmr.msra.gmra.mxu1 %vm534_vm1, %v4379_v16  ;;  %584 = vmatprep.subr.mxu0 %v527_v15  ;;  %v643_v43 = vld [vmem:[%s5132_s2] sm:$0xff]  ;;  %v3507_v44 = vld [vmem:[%s5131_s1 + $0x98] sm:$0xff]  ;;  %v3505_v46 = vld [vmem:[%s5131_s1 + $0x88] sm:$0xff] }
  0x16   : > { %585 = vmatpush1.msra.mxu0 %v526_v17  ;;  %618 = vmatprep.mubr.f32.mxu0 %v4224_v14  ;;  %v3504_v47 = vld [vmem:[%s5131_s1 + $0x80] sm:$0xff]  ;;  %v644_v48 = vld [vmem:[%s5132_s2 + $0x8] sm:$0x3]  ;;  %v3535_v1 = vld [vmem:[%s5134_s4 + $0x98] sm:$0xff] }
  0x17   : > { %730 = vmatprep.mubr.f32.mxu1 %v4224_v14  ;;  %3476 = vmatmul.mubr.msk.f32.vlgmr.msra.gmra.mxu0 %vm534_vm1, %v4379_v16  ;;  %v3518_v61 = vld [vmem:[%s5132_s2 + $0x20] sm:$0xff]  ;;  %v3519_v62 = vld [vmem:[%s5132_s2 + $0x28] sm:$0x3]  ;;  %v3534_v4 = vld [vmem:[%s5134_s4 + $0x90] sm:$0xff] }
  0x18   : > { %624 = vmatprep.mubr.f32.mxu0 %v4224_v14  ;;  %v1175_v0 = vld [vmem:[%s5134_s4 + $0x48] sm:$0xff]  ;;  %v1174_v2 = vld [vmem:[%s5134_s4 + $0x40] sm:$0xff]  ;;  %v1173_v6 = vld [vmem:[%s5134_s4 + $0x38] sm:$0xff] }
  0x19   : > { %3491 = vmatmul.mubr.msk.f32.gmra.mxu1 %vm534_vm1, %v4387_v18  ;;  %v3533_v7 = vld [vmem:[%s5134_s4 + $0x88] sm:$0xff]  ;;  %v1172_v8 = vld [vmem:[%s5134_s4 + $0x30] sm:$0xff]  ;;  %v3532_v10 = vld [vmem:[%s5134_s4 + $0x80] sm:$0xff] }
  0x1a   : > { %736 = vmatprep.mubr.f32.mxu1 %v4224_v14  ;;  %v1171_v15 = vld [vmem:[%s5134_s4 + $0x28] sm:$0xff] }
  0x1b   : > { %3477 = vmatmul.mubr.msk.f32.gmra.mxu0 %vm534_vm1, %v4387_v18 }
  0x1c   : > { %630 = vmatprep.mubr.f32.mxu0 %v4224_v14 }
  0x1d   : > { %3492 = vmatmul.mubr.msk.f32.gmra.mxu1 %vm534_vm1, %v4396_v19 }
  0x1e   : > { %742 = vmatprep.mubr.f32.mxu1 %v4224_v14 }
  0x1f   : > { %3478 = vmatmul.mubr.msk.f32.gmra.mxu0 %vm534_vm1, %v4396_v19 }
  0x20   : > { %636 = vmatprep.mubr.f32.mxu0 %v4224_v14 }
  0x21   : > { %3493 = vmatmul.mubr.msk.f32.gmra.mxu1 %vm534_vm1, %v4404_v20 }
  0x22   : > { %917 = vmatprep.mubr.f32.mxu1 %v4224_v14 }
  0x23   : > { %3479 = vmatmul.mubr.msk.f32.gmra.mxu0 %vm534_vm1, %v4404_v20 }
  0x24   : > { %828 = vmatprep.mubr.f32.mxu0 %v4224_v14 }
  0xd5   : > { %v726_v21 = vpop.f32.mrf.mxu1 }
  0xd7   : > { %v728_v22 = vpop.f32.mrf.mxu1  ;;  %v620_v23 = vpop.f32.mrf.mxu0 }
  0xd9   : > { %v732_v24 = vpop.f32.mrf.mxu1  ;;  %v622_v25 = vpop.f32.mrf.mxu0 }
  0xdb   : > { %v734_v26 = vpop.f32.mrf.mxu1  ;;  %v626_v27 = vpop.f32.mrf.mxu0 }
  0xdd   : > { %v738_v28 = vpop.f32.mrf.mxu1  ;;  %v628_v29 = vpop.f32.mrf.mxu0 }
  0xdf   : > { %v740_v30 = vpop.f32.mrf.mxu1  ;;  %v632_v31 = vpop.f32.mrf.mxu0 }
  0xe1   : > { %v744_v32 = vpop.f32.mrf.mxu1  ;;  %v634_v33 = vpop.f32.mrf.mxu0 }
  0xe3   : > { %v746_v34 = vpop.f32.mrf.mxu1  ;;  %v638_v35 = vpop.f32.mrf.mxu0 }
  0xe4   : > { %3496 = vmatprep.subr.msk.mxu0 %vm547_vm0, %v746_v34  ;;  %v1166_v34 = vld [vmem:[%s5134_s4] sm:$0xff] }
  0xe5   : > { %3497 = vmatpush1.msk.msra.mxu0 %vm547_vm0, %v744_v32  ;;  %v640_v36 = vpop.f32.mrf.mxu0  ;;  %v1167_v32 = vld [vmem:[%s5134_s4 + $0x8] sm:$0xff] }
  0xe6   : > { %790 = vmatprep.subr.mxu0 %v740_v30  ;;  %3500 = vmatprep.subr.msk.mxu1 %vm547_vm0, %v640_v36  ;;  %v3528_v30 = vld [vmem:[%s5134_s4 + $0x60] sm:$0xff] }
  0xe7   : > { %791 = vmatpush1.msra.mxu0 %v738_v28  ;;  %3501 = vmatpush1.msk.msra.mxu1 %vm547_vm0, %v638_v35  ;;  %v3526_v35 = vld [vmem:[%s5134_s4 + $0x50] sm:$0xff] }
  0xe8   : > { %792 = vmatprep.subr.mxu0 %v734_v26  ;;  %879 = vmatprep.subr.mxu1 %v634_v33  ;;  %v3529_v26 = vld [vmem:[%s5134_s4 + $0x68] sm:$0xff]  ;;  %v3527_v33 = vld [vmem:[%s5134_s4 + $0x58] sm:$0xff] }
  0xe9   : > { %793 = vmatpush1.msra.mxu0 %v732_v24  ;;  %880 = vmatpush1.msra.mxu1 %v632_v31 }
  0xea   : > { %794 = vmatprep.subr.mxu0 %v728_v22  ;;  %881 = vmatprep.subr.mxu1 %v628_v29  ;;  %v1168_v29 = vld [vmem:[%s5134_s4 + $0x10] sm:$0xff] }
  0xeb   : > { %795 = vmatpush1.msra.mxu0 %v726_v21  ;;  %882 = vmatpush1.msra.mxu1 %v626_v27  ;;  %v3530_v21 = vld [vmem:[%s5134_s4 + $0x70] sm:$0xff] }
  0xec   : > { %3498 = vmatmul.mubr.msk.f32.vlgmr.msra.gmra.mxu0 %vm534_vm1, %v3494_v37  ;;  %3512 = vmatprep.subr.msk.mxu0 %vm547_vm0, %v3511_v38 }
  0xed   : > { %3513 = vmatpush1.msk.msra.mxu0 %vm547_vm0, %v3510_v39  ;;  %883 = vmatprep.subr.mxu1 %v622_v25  ;;  %v1169_v25 = vld [vmem:[%s5134_s4 + $0x18] sm:$0xff] }
  0xee   : > { %971 = vmatprep.subr.mxu0 %v3509_v40  ;;  %834 = vmatprep.mubr.f32.mxu0 %v4224_v14 }
  0xef   : > { %884 = vmatpush1.msra.mxu1 %v620_v23  ;;  %972 = vmatpush1.msra.mxu0 %v3508_v41 }
  0xf0   : > { %3499 = vmatmul.mubr.msk.f32.gmra.mxu0 %vm534_vm1, %v3495_v42  ;;  %3502 = vmatmul.mubr.msk.f32.vlgmr.msra.gmra.mxu1 %vm534_vm1, %v643_v43 }
  0xf1   : > { %973 = vmatprep.subr.mxu0 %v3507_v44  ;;  %923 = vmatprep.mubr.f32.mxu1 %v4224_v14 }
  0xf2   : > { %974 = vmatpush1.msra.mxu0 %v3506_v45  ;;  %1009 = vmatprep.mubr.f32.mxu0 %v4224_v14 }
  0xf3   : > { %975 = vmatprep.subr.mxu0 %v3505_v46  ;;  %v3524_v46 = vld [vmem:[%s5133_s3] ss:$0 sm:$0xff] }
  0xf4   : > { %976 = vmatpush1.msra.mxu0 %v3504_v47  ;;  %3503 = vmatmul.mubr.msk.f32.gmra.mxu1 %vm534_vm1, %v644_v48 }
  0xf5   : > { %3514 = vmatmul.mubr.msk.f32.vlgmr.msra.gmra.mxu0 %vm534_vm1, %v4379_v16  ;;  %1113 = vmatprep.mubr.f32.mxu1 %v4224_v14  ;;  %v3531_v16 = vld [vmem:[%s5134_s4 + $0x78] sm:$0xff] }
  0xf6   : > { %1015 = vmatprep.mubr.f32.mxu0 %v4224_v14  ;;  %3850 = vmatprep.subr.mxu0 %v4224_v14 }
  0xf7   : > { %3851 = vmatpush3.msra.mxu0 %v1175_v0  ;;  %v3544_v0 = vld [vmem:[%s5134_s4 + $0xb0] sm:$0xff] }
  0xf8   : > { %3852 = vmatprep.subr.mxu0 %v4224_v14 }
  0xf9   : > { %3515 = vmatmul.mubr.msk.f32.gmra.mxu0 %vm534_vm1, %v4387_v18 }
  0xfa   : > { %1021 = vmatprep.mubr.f32.mxu0 %v4224_v14  ;;  %3853 = vmatpush3.msra.mxu0 %v1174_v2  ;;  %v3542_v2 = vld [vmem:[%s5134_s4 + $0xa0] sm:$0xff] }
  0xfb   : > { %3854 = vmatprep.subr.mxu0 %v4224_v14 }
  0xfc   : > { %3855 = vmatpush3.msra.mxu0 %v1173_v6 }
  0xfd   : > { %3516 = vmatmul.mubr.msk.f32.gmra.mxu0 %vm534_vm1, %v4396_v19  ;;  %3856 = vmatprep.subr.mxu0 %v4224_v14 }
  0xfe   : > { %1027 = vmatprep.mubr.f32.mxu0 %v4224_v14  ;;  %3857 = vmatpush3.msra.mxu0 %v1172_v8  ;;  %v3553_v8 = vld [vmem:[%s5135_s5 + $0x8] sm:$0xf] }
  0xff   : > { %3858 = vmatprep.subr.mxu0 %v4224_v14 }
 0x100   : > { %3859 = vmatpush3.msra.mxu0 %v1171_v15  ;;  %v3566_v15 = vld [vmem:[%s5137_s7 + $0x20] sm:$0xff] }
 0x101   : > { %3517 = vmatmul.mubr.msk.f32.gmra.mxu0 %vm534_vm1, %v4404_v20  ;;  %3860 = vmatprep.subr.mxu0 %v4224_v14  ;;  %v1170_v20 = vld [vmem:[%s5134_s4 + $0x20] sm:$0xff] }
 0x102   : > { %3861 = vmatpush3.msra.mxu0 %v1170_v20  ;;  %3870 = vmatprep.mubr.msk.f32.mxu0 %vm4226_vm2, %v4224_v14 }
 0x103   : > { %3862 = vmatprep.subr.mxu0 %v4224_v14 }
 0x104   : > { %3863 = vmatpush3.msra.mxu0 %v1169_v25 }
 0x105   : > { %3864 = vmatprep.subr.mxu0 %v4224_v14 }
 0x106   : > { %3865 = vmatpush3.msra.mxu0 %v1168_v29  ;;  %v2141_v29 = vld [vmem:[%s5140_s10 + $0x40] sm:$0xff] }
 0x107   : > { %3866 = vmatprep.subr.mxu0 %v4224_v14 }
 0x108   : > { %3867 = vmatpush3.msra.mxu0 %v1167_v32 }
 0x109   : > { %3868 = vmatprep.subr.mxu0 %v4224_v14 }
 0x10a   : > { %3869 = vmatpush3.msra.mxu0 %v1166_v34  ;;  %v3561_v34 = vld [vmem:[%s5138_s8 + $0x8] sm:$0x1f] }
 0x10b   : > { %3896 = vmatprep.subr.mxu0 %v4224_v14 }
 0x1ac   : > { %v830_v49 = vpop.f32.mrf.mxu0 }
 0x1ae   : > { %v832_v50 = vpop.f32.mrf.mxu0 }
 0x1b0   : > { %v836_v51 = vpop.f32.mrf.mxu0  ;;  %v919_v63 = vpop.f32.mrf.mxu1 }
 0x1b1   : > { %v920_v11 = vadd.f32 %v919_v63, %v830_v49  ;;  %v3545_v63 = vld [vmem:[%s5134_s4 + $0xb8] sm:$0xff] }
 0x1b2   : > { %v4477_v52 = vpop.f32.mrf.mxu0  ;;  %v921_v3 = vpop.f32.mrf.mxu1 }
 0x1b3   : > { %v922_v18 = vadd.f32 %v921_v3, %v832_v50 }
 0x1b4   : > { %v925_v5 = vpop.f32.mrf.mxu1 }
 0x1b5   : > { %v1011_v53 = vpop.f32.mrf.mxu0  ;;  %v926_v19 = vadd.f32 %v925_v5, %v836_v51  ;;  %v3537_v51 = vld [vmem:[%s5135_s5 + $0x4] sm:$0xf] }
 0x1b6   : > { %v927_v9 = vpop.f32.mrf.mxu1 }
 0x1b7   : > { %v1013_v54 = vpop.f32.mrf.mxu0  ;;  %v928_v28 = vadd.f32 %v927_v9, %v4477_v52 }
 0x1b9   : > { %v1017_v55 = vpop.f32.mrf.mxu0 }
 0x1bb   : > { %v1019_v56 = vpop.f32.mrf.mxu0 }
 0x1bd   : > { %v1023_v57 = vpop.f32.mrf.mxu0 }
 0x1bf   : > { %v1025_v58 = vpop.f32.mrf.mxu0 }
 0x1c1   : > { %v1029_v59 = vpop.f32.mrf.mxu0 }
 0x1c3   : > { %v1031_v60 = vpop.f32.mrf.mxu0 }
 0x1c4   : > { %3520 = vmatprep.subr.msk.mxu1 %vm547_vm0, %v1031_v60  ;;  %v3548_v60 = vld [vmem:[%s5134_s4 + $0xd0] sm:$0xff] }
 0x1c5   : > { %3521 = vmatpush1.msk.msra.mxu1 %vm547_vm0, %v1029_v59  ;;  %v3549_v59 = vld [vmem:[%s5134_s4 + $0xd8] sm:$0xff] }
 0x1c6   : > { %1075 = vmatprep.subr.mxu1 %v1025_v58  ;;  %v3550_v58 = vld [vmem:[%s5134_s4 + $0xe0] sm:$0xff] }
 0x1c7   : > { %1076 = vmatpush1.msra.mxu1 %v1023_v57 }
 0x1c8   : > { %1077 = vmatprep.subr.mxu1 %v1019_v56 }
 0x1c9   : > { %1078 = vmatpush1.msra.mxu1 %v1017_v55  ;;  %v1250_v55 = vld [vmem:[%s5135_s5] sm:$0xf] }
 0x1ca   : > { %1079 = vmatprep.subr.mxu1 %v1013_v54  ;;  %v3551_v54 = vld [vmem:[%s5134_s4 + $0xe8] sm:$0xff] }
 0x1cb   : > { %1080 = vmatpush1.msra.mxu1 %v1011_v53 }
 0x1cc   : > { %3522 = vmatmul.mubr.msk.f32.vlgmr.msra.gmra.mxu1 %vm534_vm1, %v3518_v61  ;;  %3873 = vmatprep.subr.mxu1 %v4224_v14  ;;  %v3547_v61 = vld [vmem:[%s5134_s4 + $0xc8] sm:$0xff] }
 0x1cd   : > { %1119 = vmatprep.mubr.f32.mxu1 %v4224_v14  ;;  %3874 = vmatpush3.msra.mxu1 %v3535_v1  ;;  %v3543_v1 = vld [vmem:[%s5134_s4 + $0xa8] sm:$0xff] }
 0x1ce   : > { %3875 = vmatprep.subr.mxu1 %v4224_v14 }
 0x1cf   : > { %3876 = vmatpush3.msra.mxu1 %v3534_v4 }
 0x1d0   : > { %3523 = vmatmul.mubr.msk.f32.gmra.mxu1 %vm534_vm1, %v3519_v62  ;;  %3877 = vmatprep.subr.mxu1 %v4224_v14  ;;  %v3546_v62 = vld [vmem:[%s5134_s4 + $0xc0] sm:$0xff] }
 0x1d1   : > { %3878 = vmatpush3.msra.mxu1 %v3533_v7  ;;  %3893 = vmatprep.mubr.msk.f32.mxu1 %vm4226_vm2, %v4224_v14 }
 0x1d2   : > { %3879 = vmatprep.subr.mxu1 %v4224_v14 }
 0x1d3   : > { %3880 = vmatpush3.msra.mxu1 %v3532_v10 }
 0x1d4   : > { %3881 = vmatprep.subr.mxu1 %v4224_v14 }
 0x1d5   : > { %3882 = vmatpush3.msra.mxu1 %v3531_v16 }
 0x1d6   : > { %3883 = vmatprep.subr.mxu1 %v4224_v14 }
 0x1d7   : > { %3884 = vmatpush3.msra.mxu1 %v3530_v21 }
 0x1d8   : > { %3885 = vmatprep.subr.mxu1 %v4224_v14 }
 0x1d9   : > { %3886 = vmatpush3.msra.mxu1 %v3529_v26  ;;  %v3559_v26 = vld [vmem:[%s5137_s7 + $0x18] sm:$0xff] }
 0x1da   : > { %3887 = vmatprep.subr.mxu1 %v4224_v14 }
 0x1db   : > { %3888 = vmatpush3.msra.mxu1 %v3528_v30 }
 0x1dc   : > { %3889 = vmatprep.subr.mxu1 %v4224_v14 }
 0x1dd   : > { %3890 = vmatpush3.msra.mxu1 %v3527_v33 }
 0x1de   : > { %3891 = vmatprep.subr.mxu1 %v4224_v14 }
 0x1df   : > { %3892 = vmatpush3.msra.mxu1 %v3526_v35 }
 0x1e0   : > { %3901 = vmatprep.subr.mxu1 %v4224_v14 }
 0x28c   : > { %v1115_v12 = vpop.f32.mrf.mxu1 }
 0x28d   : > { %v1126_v13 = vadd.f32 %v1115_v12, %v920_v11  ;;  %v1667_v11 = vld [vmem:[%s5137_s7 + $0x8] sm:$0xff] }
 0x28e   : > { %v1117_v17 = vpop.f32.mrf.mxu1  ;;  %v3567_v12 = vld [vmem:[%s5137_s7 + $0x28] sm:$0xff] }
 0x28f   : > { %1132 = vrot.lane.b32.xlu0 %v1126_v13, %s4225_s19  ;;  %v1127_v23 = vadd.f32 %v1117_v17, %v922_v18 }
 0x290   : > { %v1121_v22 = vpop.f32.mrf.mxu1 }
 0x291   : > { %v1128_v24 = vadd.f32 %v1121_v22, %v926_v19  ;;  %v3556_v22 = vld [vmem:[%s5136_s6] ss:$0 sm:$0xff] }
 0x292   : > { %v1123_v27 = vpop.f32.mrf.mxu1 }
 0x293   : > { %1134 = vrot.lane.b32.xlu0 %v1127_v23, %s4225_s19  ;;  %1142 = vrot.lane.b32.xlu1 %v1128_v24, %s4225_s19  ;;  %v1129_v31 = vadd.f32 %v1123_v27, %v928_v28  ;;  %v3558_v27 = vld [vmem:[%s5137_s7 + $0x10] sm:$0xff]  ;;  %v2142_v28 = vld [vmem:[%s5140_s10 + $0x48] sm:$0xff] }
 0x297   : > { %1144 = vrot.lane.b32.xlu1 %v1129_v31, %s4225_s19  ;;  %s4227_s19 = smov 112  }
 0x301   : > { %v1133_v36 = vpop.permute.xlu0 %1132 }
 0x305   : > { %v1135_v37 = vpop.permute.xlu0 %1134  ;;  %v1143_v38 = vpop.permute.xlu1 %1142 }
 0x306   : > { %v1137_v39 = vsel %vm1136_vm3, %v1133_v36, %v1135_v37  ;;  %v1742_v37 = vld [vmem:[%s5138_s8] sm:$0x1f] }
 0x307   : > { %v1139_v40 = vmax.f32 %v1126_v13, %v1137_v39  ;;  %v1666_v13 = vld [vmem:[%s5137_s7] sm:$0xff]  ;;  %v3583_v39 = vld [vmem:[%s5140_s10 + $0x98] sm:$0xff] }
 0x309   : > { %v1145_v41 = vpop.permute.xlu1 %1144  ;;  %v1152_v44 = vrot.slane %v1139_v40, 5 }
 0x30a   : > { %v1146_v42 = vsel %vm1136_vm3, %v1143_v38, %v1145_v41  ;;  %v3569_v38 = vld [vmem:[%s5138_s8 + $0x10] sm:$0x1f]  ;;  %v2140_v41 = vld [vmem:[%s5140_s10 + $0x38] sm:$0xff] }
 0x30b   : > { %v1148_v43 = vmax.f32 %v1128_v24, %v1146_v42  ;;  %v3581_v42 = vld [vmem:[%s5140_s10 + $0x88] sm:$0xff] }
 0x30d   : > { %v1153_v45 = vrot.slane %v1148_v43, 5  ;;  %v2139_v43 = vld [vmem:[%s5140_s10 + $0x30] sm:$0xff] }
 0x30f   : > { %v1154_v47 = vsel %vm1151_vm4, %v1152_v44, %v1153_v45  ;;  %v3580_v44 = vld [vmem:[%s5140_s10 + $0x80] sm:$0xff]  ;;  %v2138_v45 = vld [vmem:[%s5140_s10 + $0x28] sm:$0xff] }
 0x310   : > { %v1156_v48 = vmax.f32 %v1139_v40, %v1154_v47  ;;  %v3582_v40 = vld [vmem:[%s5140_s10 + $0x90] sm:$0xff]  ;;  %v2137_v47 = vld [vmem:[%s5140_s10 + $0x20] sm:$0xff] }
 0x312   : > { %v1164_v49 = vadd.f32 %v3524_v46, %v1156_v48  ;;  %v3579_v46 = vld [vmem:[%s5140_s10 + $0x78] sm:$0xff]  ;;  %v3578_v48 = vld [vmem:[%s5140_s10 + $0x70] sm:$0xff] }
 0x314   : > { %v1165_v50 = vmax.f32 %v1164_v49, 0.0  ;;  %v2136_v49 = vld [vmem:[%s5140_s10 + $0x18] sm:$0xff] }
 0x316   : > { %3871 = vmatmul.mubr.msk.f32.vlgmr.msra.gmra.mxu0 %vm1176_vm5, %v1165_v50  ;;  %3894 = vmatmul.mubr.msk.f32.vlgmr.msra.gmra.mxu1 %vm1176_vm5, %v1165_v50 }
 0x317   : > { %3898 = vmatprep.mubr.msk.f32.mxu0 %vm4226_vm2, %v4224_v14  ;;  %3903 = vmatprep.mubr.msk.f32.mxu1 %vm4226_vm2, %v4224_v14 }
 0x3d6   : > { %v1246_v52 = vpop.f32.mrf.mxu0  ;;  %v1328_v53 = vpop.f32.mrf.mxu1 }
 0x3d7   : > { %3897 = vmatpush3.msk.msra.mxu0 %vm1338_vm6, %v1328_v53  ;;  %3902 = vmatpush3.msk.msra.mxu1 %vm1338_vm6, %v1246_v52  ;;  %v3576_v52 = vld [vmem:[%s5140_s10 + $0x60] sm:$0xff]  ;;  %v2134_v53 = vld [vmem:[%s5140_s10 + $0x8] sm:$0xff] }
 0x3d8   : > { %v3872_v56 = vpop.f32.mrf.mxu0  ;;  %v3895_v57 = vpop.f32.mrf.mxu1  ;;  %3906 = vmatprep.subr.mxu0 %v4224_v14  ;;  %3899 = vmatmul.mubr.msk.f32.vlgmr.msra.gmra.mxu0 %vm1334_vm7, %v3537_v51  ;;  %v2135_v51 = vld [vmem:[%s5140_s10 + $0x10] sm:$0xff] }
 0x3d9   : > { %3907 = vmatpush3.msra.mxu0 %v3551_v54  ;;  %3904 = vmatmul.mubr.msk.f32.vlgmr.msra.gmra.mxu1 %vm1334_vm7, %v1250_v55  ;;  %v3575_v54 = vld [vmem:[%s5140_s10 + $0x58] sm:$0xff]  ;;  %v2133_v55 = vld [vmem:[%s5140_s10] sm:$0xff]  ;;  %v3574_v56 = vld [vmem:[%s5140_s10 + $0x50] sm:$0xff] }
 0x3da   : > { %3908 = vmatprep.subr.mxu0 %v4224_v14  ;;  %3926 = vmatprep.mubr.msk.f32.mxu0 %vm4226_vm2, %v4224_v14 }
 0x3db   : > { %3909 = vmatpush3.msra.mxu0 %v3550_v58  ;;  %3929 = vmatprep.subr.mxu1 %v4224_v14 }
 0x3dc   : > { %3910 = vmatprep.subr.mxu0 %v4224_v14  ;;  %3931 = vmatprep.mubr.msk.f32.mxu1 %vm4226_vm2, %v4224_v14 }
 0x3dd   : > { %3911 = vmatpush3.msra.mxu0 %v3549_v59 }
 0x3de   : > { %3912 = vmatprep.subr.mxu0 %v4224_v14 }
 0x3df   : > { %3913 = vmatpush3.msra.mxu0 %v3548_v60 }
 0x3e0   : > { %3914 = vmatprep.subr.mxu0 %v4224_v14 }
 0x3e1   : > { %3915 = vmatpush3.msra.mxu0 %v3547_v61 }
 0x3e2   : > { %3916 = vmatprep.subr.mxu0 %v4224_v14 }
 0x3e3   : > { %3917 = vmatpush3.msra.mxu0 %v3546_v62 }
 0x3e4   : > { %3918 = vmatprep.subr.mxu0 %v4224_v14 }
 0x3e5   : > { %3919 = vmatpush3.msra.mxu0 %v3545_v63  ;;  %v3572_v63 = vld [vmem:[%s5139_s9] ss:$0 sm:$0xff] }
 0x3e6   : > { %3920 = vmatprep.subr.mxu0 %v4224_v14 }
 0x3e7   : > { %3921 = vmatpush3.msra.mxu0 %v3544_v0 }
 0x3e8   : > { %3922 = vmatprep.subr.mxu0 %v4224_v14 }
 0x3e9   : > { %3923 = vmatpush3.msra.mxu0 %v3543_v1 }
 0x3ea   : > { %3924 = vmatprep.subr.mxu0 %v4224_v14 }
 0x3eb   : > { %3925 = vmatpush3.msra.mxu0 %v3542_v2 }
 0x3ec   : > { %3927 = vmatmul.mubr.msk.f32.vlgmr.msra.gmra.mxu0 %vm1176_vm5, %v1165_v50  ;;  %3958 = vmatprep.subr.mxu0 %v4224_v14  ;;  %v3577_v50 = vld [vmem:[%s5140_s10 + $0x68] sm:$0xff] }
 0x3ed   : > { %3962 = vmatprep.mubr.msk.f32.mxu0 %vm4226_vm2, %v4224_v14  ;;  %3959 = vmatpush3.msra.mxu0 %v3567_v12 }
 0x3ee   : > { %3960 = vmatprep.subr.mxu0 %v4224_v14 }
 0x3ef   : > { %3961 = vmatpush3.msra.mxu0 %v3566_v15  ;;  %v3600_v15 = vld [vmem:[%s5140_s10 + $0xd8] sm:$0xff] }
 0x3f0   : > { %3970 = vmatprep.subr.mxu0 %v4224_v14 }
 0x498   : > { %v1408_v3 = vpop.f32.mrf.mxu0 }
 0x499   : > { %v1484_v4 = vpop.f32.mrf.mxu1 }
 0x49a   : > { %v3900_v5 = vpop.f32.mrf.mxu0  ;;  %v1485_v6 = vadd.f32 %v1484_v4, %v1408_v3  ;;  %v3585_v4 = vld [vmem:[%s5141_s11 + $0x10] sm:$0xff] }
 0x49b   : > { %v3905_v7 = vpop.f32.mrf.mxu1  ;;  %v2216_v5 = vld [vmem:[%s5141_s11] sm:$0xff] }
 0x4ac   : > { %v1565_v9 = vpop.f32.mrf.mxu0 }
 0x4ad   : > { %3930 = vmatpush3.msk.msra.mxu1 %vm1338_vm6, %v1565_v9  ;;  %v3602_v9 = vld [vmem:[%s5140_s10 + $0xe8] sm:$0xff] }
 0x4ae   : > { %v3928_v10 = vpop.f32.mrf.mxu0  ;;  %3932 = vmatmul.mubr.msk.f32.vlgmr.msra.gmra.mxu1 %vm1334_vm7, %v3553_v8  ;;  %3934 = vmatprep.subr.mxu1 %v4224_v14  ;;  %v3586_v8 = vld [vmem:[%s5141_s11 + $0x18] sm:$0x7f] }
 0x4af   : > { %3938 = vmatprep.mubr.msk.f32.mxu1 %vm4226_vm2, %v4224_v14  ;;  %3935 = vmatpush3.msra.mxu1 %v1667_v11  ;;  %v2217_v10 = vld [vmem:[%s5141_s11 + $0x8] sm:$0x7f] }
 0x4b0   : > { %3936 = vmatprep.subr.mxu1 %v4224_v14 }
 0x4b1   : > { %3937 = vmatpush3.msra.mxu1 %v1666_v13  ;;  %v3601_v13 = vld [vmem:[%s5140_s10 + $0xe0] sm:$0xff] }
 0x4b2   : > { %3941 = vmatprep.subr.mxu1 %v4224_v14 }
 0x56e   : > { %v1643_v16 = vpop.f32.mrf.mxu1 }
 0x56f   : > { %v1647_v17 = vadd.f32 %v1643_v16, %v1485_v6  ;;  %v3599_v16 = vld [vmem:[%s5140_s10 + $0xd0] sm:$0xff] }
 0x570   : > { %v3933_v18 = vpop.f32.mrf.mxu1 }
 0x571   : > { %1649 = vrot.lane.b32.xlu0 %v1647_v17, %s4227_s19  ;;  %v3597_v18 = vld [vmem:[%s5140_s10 + $0xc0] sm:$0xff] }
 0x5e3   : > { %v1650_v19 = vpop.permute.xlu0 %1649 }
 0x5e4   : > { %v1652_v20 = vmax.f32 %v1647_v17, %v1650_v19  ;;  %v3598_v17 = vld [vmem:[%s5140_s10 + $0xc8] sm:$0xff]  ;;  %v3596_v19 = vld [vmem:[%s5140_s10 + $0xb8] sm:$0xff] }
 0x5e6   : > { %v1654_v21 = vrot.slane %v1652_v20, 2 }
 0x5e8   : > { %v1656_v23 = vmax.f32 %v1652_v20, %v1654_v21  ;;  %v3595_v20 = vld [vmem:[%s5140_s10 + $0xb0] sm:$0xff]  ;;  %v3594_v21 = vld [vmem:[%s5140_s10 + $0xa8] sm:$0xff] }
 0x5ea   : > { %v1664_v24 = vadd.f32 %v3556_v22, %v1656_v23  ;;  %v3593_v22 = vld [vmem:[%s5140_s10 + $0xa0] sm:$0xff] }
 0x5eb   : > { %v3604_v23 = vld [vmem:[%s5141_s11 + $0x20] sm:$0xff] }
 0x5ec   : > { %v1665_v25 = vmax.f32 %v1664_v24, 0.0 }
 0x5ee   : > { %3939 = vmatmul.mubr.msk.f32.vlgmr.msra.gmra.mxu1 %vm1668_vm8, %v1665_v25  ;;  %3963 = vmatmul.mubr.msk.f32.vlgmr.msra.gmra.mxu0 %vm1668_vm8, %v1665_v25 }
 0x5ef   : > { %3942 = vmatpush3.msra.mxu1 %v3559_v26  ;;  %3945 = vmatprep.mubr.msk.f32.mxu1 %vm4226_vm2, %v4224_v14 }
 0x5f0   : > { %3943 = vmatprep.subr.mxu1 %v4224_v14  ;;  %3990 = vmatprep.mubr.msk.f32.mxu0 %vm4226_vm2, %v4224_v14 }
 0x5f1   : > { %3944 = vmatpush3.msra.mxu1 %v3558_v27  ;;  %3971 = vmatpush3.msra.mxu0 %v2142_v28 }
 0x5f2   : > { %3946 = vmatmul.mubr.msk.f32.vlgmr.msra.gmra.mxu1 %vm1668_vm8, %v1665_v25  ;;  %3948 = vmatprep.subr.mxu1 %v4224_v14 }
 0x5f3   : > { %3950 = vmatprep.mubr.msk.f32.mxu1 %vm4226_vm2, %v4224_v14  ;;  %3972 = vmatprep.subr.mxu0 %v4224_v14 }
 0x5f4   : > { %3973 = vmatpush3.msra.mxu0 %v2141_v29  ;;  %v3605_v29 = vld [vmem:[%s5141_s11 + $0x28] sm:$0x7f] }
 0x5f5   : > { %3974 = vmatprep.subr.mxu0 %v4224_v14 }
 0x5f6   : > { %3975 = vmatpush3.msra.mxu0 %v2140_v41  ;;  %v3620_v41 = vld [vmem:[%s5141_s11 + $0x30] sm:$0xff] }
 0x5f7   : > { %3976 = vmatprep.subr.mxu0 %v4224_v14 }
 0x5f8   : > { %3977 = vmatpush3.msra.mxu0 %v2139_v43 }
 0x5f9   : > { %3978 = vmatprep.subr.mxu0 %v4224_v14 }
 0x5fa   : > { %3979 = vmatpush3.msra.mxu0 %v2138_v45 }
 0x5fb   : > { %3980 = vmatprep.subr.mxu0 %v4224_v14 }
 0x5fc   : > { %3981 = vmatpush3.msra.mxu0 %v2137_v47 }
 0x5fd   : > { %3982 = vmatprep.subr.mxu0 %v4224_v14 }
 0x5fe   : > { %3983 = vmatpush3.msra.mxu0 %v2136_v49  ;;  %v3621_v49 = vld [vmem:[%s5141_s11 + $0x38] sm:$0x7f] }
 0x5ff   : > { %3984 = vmatprep.subr.mxu0 %v4224_v14 }
 0x600   : > { %3985 = vmatpush3.msra.mxu0 %v2135_v51 }
 0x601   : > { %3986 = vmatprep.subr.mxu0 %v4224_v14 }
 0x602   : > { %3987 = vmatpush3.msra.mxu0 %v2134_v53  ;;  %v3632_v53 = vld [vmem:[%s5140_s10 + $0x178] sm:$0xff] }
 0x603   : > { %3988 = vmatprep.subr.mxu0 %v4224_v14 }
 0x604   : > { %3989 = vmatpush3.msra.mxu0 %v2133_v55  ;;  %v3630_v55 = vld [vmem:[%s5140_s10 + $0x168] sm:$0xff] }
 0x6ae   : > { %v1738_v30 = vpop.f32.mrf.mxu1  ;;  %v2041_v31 = vpop.f32.mrf.mxu0 }
 0x6b0   : > { %v3940_v32 = vpop.f32.mrf.mxu1  ;;  %v3964_v33 = vpop.f32.mrf.mxu0 }
 0x6b1   : > { %v3617_v32 = vld [vmem:[%s5140_s10 + $0x130] sm:$0xff]  ;;  %v3616_v33 = vld [vmem:[%s5140_s10 + $0x128] sm:$0xff] }
 0x6b2   : > { %v1812_v35 = vpop.f32.mrf.mxu1 }
 0x6b3   : > { %3949 = vmatpush3.msk.msra.mxu1 %vm1822_vm9, %v1812_v35  ;;  %v3614_v35 = vld [vmem:[%s5140_s10 + $0x118] sm:$0xff] }
 0x6b4   : > { %v3947_v36 = vpop.f32.mrf.mxu1  ;;  %3951 = vmatmul.mubr.msk.f32.vlgmr.msra.gmra.mxu1 %vm1818_vm10, %v3561_v34  ;;  %3953 = vmatprep.subr.mxu1 %v4224_v14  ;;  %v3615_v34 = vld [vmem:[%s5140_s10 + $0x120] sm:$0xff] }
 0x6b5   : > { %3954 = vmatpush3.msk.msra.mxu1 %vm1822_vm9, %v1738_v30  ;;  %3955 = vmatprep.mubr.msk.f32.mxu1 %vm4226_vm2, %v4224_v14  ;;  %v3618_v30 = vld [vmem:[%s5140_s10 + $0x138] sm:$0xff]  ;;  %v3613_v36 = vld [vmem:[%s5140_s10 + $0x110] sm:$0xff] }
 0x6b6   : > { %3965 = vmatprep.subr.mxu1 %v4224_v14 }
 0x6b8   : > { %3956 = vmatmul.mubr.msk.f32.vlgmr.msra.gmra.mxu1 %vm1818_vm10, %v1742_v37  ;;  %v3612_v37 = vld [vmem:[%s5140_s10 + $0x108] sm:$0xff] }
 0x6b9   : > { %3966 = vmatpush3.msk.msra.mxu1 %vm1822_vm9, %v2041_v31  ;;  %3967 = vmatprep.mubr.msk.f32.mxu1 %vm4226_vm2, %v4224_v14 }
 0x6ba   : > { %3993 = vmatprep.subr.mxu1 %v4224_v14 }
 0x6bc   : > { %3968 = vmatmul.mubr.msk.f32.vlgmr.msra.gmra.mxu1 %vm1818_vm10, %v3569_v38  ;;  %v3611_v38 = vld [vmem:[%s5140_s10 + $0x100] sm:$0xff] }
 0x6bd   : > { %3994 = vmatpush3.msra.mxu1 %v3583_v39  ;;  %4013 = vmatprep.mubr.msk.f32.mxu1 %vm4226_vm2, %v4224_v14  ;;  %v3610_v39 = vld [vmem:[%s5140_s10 + $0xf8] sm:$0xff] }
 0x6be   : > { %3995 = vmatprep.subr.mxu1 %v4224_v14 }
 0x6bf   : > { %3996 = vmatpush3.msra.mxu1 %v3582_v40  ;;  %v3609_v40 = vld [vmem:[%s5140_s10 + $0xf0] sm:$0xff] }
 0x6c0   : > { %3997 = vmatprep.subr.mxu1 %v4224_v14 }
 0x6c1   : > { %3998 = vmatpush3.msra.mxu1 %v3581_v42 }
 0x6c2   : > { %3999 = vmatprep.subr.mxu1 %v4224_v14 }
 0x6c3   : > { %4000 = vmatpush3.msra.mxu1 %v3580_v44 }
 0x6c4   : > { %4001 = vmatprep.subr.mxu1 %v4224_v14 }
 0x6c5   : > { %4002 = vmatpush3.msra.mxu1 %v3579_v46 }
 0x6c6   : > { %4003 = vmatprep.subr.mxu1 %v4224_v14 }
 0x6c7   : > { %4004 = vmatpush3.msra.mxu1 %v3578_v48 }
 0x6c8   : > { %4005 = vmatprep.subr.mxu1 %v4224_v14 }
 0x6c9   : > { %4006 = vmatpush3.msra.mxu1 %v3577_v50  ;;  %v3634_v50 = vld [vmem:[%s5140_s10 + $0x188] sm:$0xff] }
 0x6ca   : > { %4007 = vmatprep.subr.mxu1 %v4224_v14 }
 0x6cb   : > { %4008 = vmatpush3.msra.mxu1 %v3576_v52  ;;  %v3633_v52 = vld [vmem:[%s5140_s10 + $0x180] sm:$0xff] }
 0x6cc   : > { %4009 = vmatprep.subr.mxu1 %v4224_v14 }
 0x6cd   : > { %4010 = vmatpush3.msra.mxu1 %v3575_v54  ;;  %v3631_v54 = vld [vmem:[%s5140_s10 + $0x170] sm:$0xff] }
 0x6ce   : > { %4011 = vmatprep.subr.mxu1 %v4224_v14 }
 0x6cf   : > { %4012 = vmatpush3.msra.mxu1 %v3574_v56  ;;  %v3629_v56 = vld [vmem:[%s5140_s10 + $0x160] sm:$0xff] }
 0x774   : > { %v1892_v57 = vpop.f32.mrf.mxu1 }
 0x776   : > { %v3952_v58 = vpop.f32.mrf.mxu1 }
 0x777   : > { %v3627_v58 = vld [vmem:[%s5140_s10 + $0x150] sm:$0xff] }
 0x778   : > { %v1968_v59 = vpop.f32.mrf.mxu1 }
 0x779   : > { %v1969_v61 = vadd.f32 %v1968_v59, %v1892_v57  ;;  %v3628_v57 = vld [vmem:[%s5140_s10 + $0x158] sm:$0xff]  ;;  %v3626_v59 = vld [vmem:[%s5140_s10 + $0x148] sm:$0xff] }
 0x77a   : > { %v3957_v60 = vpop.f32.mrf.mxu1 }
 0x77b   : > { %v3625_v60 = vld [vmem:[%s5140_s10 + $0x140] sm:$0xff] }
 0x77c   : > { %v2119_v62 = vpop.f32.mrf.mxu1 }
 0x77d   : > { %v2123_v0 = vadd.f32 %v2119_v62, %v1969_v61  ;;  %v3636_v61 = vld [vmem:[%s5141_s11 + $0x40] sm:$0xff]  ;;  %v3658_v62 = vld [vmem:[%s5143_s13 + $0xe8] sm:$0xff] }
 0x77e   : > { %v3969_v1 = vpop.f32.mrf.mxu1 }
 0x77f   : > { %v2131_v2 = vadd.f32 %v3572_v63, %v2123_v0  ;;  %v3656_v63 = vld [vmem:[%s5143_s13 + $0xd8] sm:$0xff]  ;;  %v3655_v0 = vld [vmem:[%s5143_s13 + $0xd0] sm:$0xff]  ;;  %v3654_v1 = vld [vmem:[%s5143_s13 + $0xc8] sm:$0xff] }
 0x781   : > { %v4791_v3 = vmax.f32 %v2131_v2, 0.0  ;;  %v3653_v2 = vld [vmem:[%s5143_s13 + $0xc0] sm:$0xff] }
 0x783   : > { %3991 = vmatmul.mubr.msk.f32.vlgmr.msra.gmra.mxu0 %vm1176_vm5, %v4791_v3  ;;  %4014 = vmatmul.mubr.msk.f32.vlgmr.msra.gmra.mxu1 %vm1176_vm5, %v4791_v3 }
 0x784   : > { %4018 = vmatprep.mubr.msk.f32.mxu0 %vm1334_vm7, %v3585_v4  ;;  %4023 = vmatprep.mubr.msk.f32.mxu1 %vm1334_vm7, %v2216_v5  ;;  %v3651_v4 = vld [vmem:[%s5143_s13 + $0xb0] sm:$0xff]  ;;  %v3650_v5 = vld [vmem:[%s5143_s13 + $0xa8] sm:$0xff] }
 0x843   : > { %v2212_v6 = vpop.f32.mrf.mxu0  ;;  %v2295_v7 = vpop.f32.mrf.mxu1 }
 0x844   : > { %4016 = vmatprep.subr.msk.mxu0 %vm1338_vm6, %v2295_v7  ;;  %4021 = vmatprep.subr.msk.mxu1 %vm1338_vm6, %v2212_v6 }
 0x845   : > { %v3992_v11 = vpop.f32.mrf.mxu0  ;;  %v4015_v12 = vpop.f32.mrf.mxu1  ;;  %4017 = vmatpush3.msk.msra.mxu0 %vm1338_vm6, %v2295_v7  ;;  %4022 = vmatpush3.msk.msra.mxu1 %vm1338_vm6, %v2212_v6  ;;  %v3649_v6 = vld [vmem:[%s5143_s13 + $0xa0] sm:$0xff] }
 0x846   : > { %4026 = vmatprep.subr.mxu0 %v4224_v14  ;;  %4019 = vmatmul.mubr.msk.f32.vlgmr.msra.gmra.mxu0 %vm1334_vm7, %v3586_v8  ;;  %v3637_v12 = vld [vmem:[%s5141_s11 + $0x48] sm:$0x7f] }
 0x847   : > { %4027 = vmatpush3.msra.mxu0 %v3602_v9  ;;  %4024 = vmatmul.mubr.msk.f32.vlgmr.msra.gmra.mxu1 %vm1334_vm7, %v2217_v10 }
 0x848   : > { %4028 = vmatprep.subr.mxu0 %v4224_v14  ;;  %4046 = vmatprep.mubr.msk.f32.mxu0 %vm4226_vm2, %v4224_v14 }
 0x849   : > { %4029 = vmatpush3.msra.mxu0 %v3601_v13  ;;  %4051 = vmatprep.mubr.msk.f32.mxu1 %vm1334_vm7, %v3604_v23  ;;  %v3005_v13 = vld [vmem:[%s5143_s13 + $0x70] sm:$0xff] }
 0x84a   : > { %4030 = vmatprep.subr.mxu0 %v4224_v14  ;;  %v2997_v23 = vld [vmem:[%s5143_s13 + $0x30] sm:$0xff] }
 0x84b   : > { %4031 = vmatpush3.msra.mxu0 %v3600_v15 }
 0x84c   : > { %4032 = vmatprep.subr.mxu0 %v4224_v14 }
 0x84d   : > { %4033 = vmatpush3.msra.mxu0 %v3599_v16  ;;  %v3004_v16 = vld [vmem:[%s5143_s13 + $0x68] sm:$0xff] }
 0x84e   : > { %4034 = vmatprep.subr.mxu0 %v4224_v14 }
 0x84f   : > { %4035 = vmatpush3.msra.mxu0 %v3598_v17  ;;  %v3003_v17 = vld [vmem:[%s5143_s13 + $0x60] sm:$0xff] }
 0x850   : > { %4036 = vmatprep.subr.mxu0 %v4224_v14 }
 0x851   : > { %4037 = vmatpush3.msra.mxu0 %v3597_v18  ;;  %v3002_v18 = vld [vmem:[%s5143_s13 + $0x58] sm:$0xff] }
 0x852   : > { %4038 = vmatprep.subr.mxu0 %v4224_v14 }
 0x853   : > { %4039 = vmatpush3.msra.mxu0 %v3596_v19  ;;  %v3001_v19 = vld [vmem:[%s5143_s13 + $0x50] sm:$0xff] }
 0x854   : > { %4040 = vmatprep.subr.mxu0 %v4224_v14 }
 0x855   : > { %4041 = vmatpush3.msra.mxu0 %v3595_v20  ;;  %v3000_v20 = vld [vmem:[%s5143_s13 + $0x48] sm:$0xff] }
 0x856   : > { %4042 = vmatprep.subr.mxu0 %v4224_v14 }
 0x857   : > { %4043 = vmatpush3.msra.mxu0 %v3594_v21  ;;  %v2999_v21 = vld [vmem:[%s5143_s13 + $0x40] sm:$0xff] }
 0x858   : > { %4044 = vmatprep.subr.mxu0 %v4224_v14 }
 0x859   : > { %4045 = vmatpush3.msra.mxu0 %v3593_v22  ;;  %v2998_v22 = vld [vmem:[%s5143_s13 + $0x38] sm:$0xff] }
 0x85a   : > { %4047 = vmatmul.mubr.msk.f32.vlgmr.msra.gmra.mxu0 %vm1176_vm5, %v4791_v3 }
 0x85b   : > { %4079 = vmatprep.mubr.msk.f32.mxu0 %vm1334_vm7, %v3620_v41 }
 0x906   : > { %v4020_v24 = vpop.f32.mrf.mxu0 }
 0x907   : > { %v4025_v25 = vpop.f32.mrf.mxu1 }
 0x908   : > { %v2467_v26 = vadd.f32 %v4025_v25, %v4020_v24  ;;  %v2377_v27 = vpop.f32.mrf.mxu0  ;;  %v2996_v24 = vld [vmem:[%s5143_s13 + $0x28] sm:$0xff]  ;;  %v2995_v25 = vld [vmem:[%s5143_s13 + $0x20] sm:$0xff] }
 0x909   : > { %v2461_v42 = vpop.f32.mrf.mxu1 }
 0x90a   : > { %v2462_v44 = vadd.f32 %v2461_v42, %v2377_v27  ;;  %v2994_v27 = vld [vmem:[%s5143_s13 + $0x18] sm:$0xff] }
 0x91a   : > { %v2547_v28 = vpop.f32.mrf.mxu0 }
 0x91b   : > { %4049 = vmatprep.subr.msk.mxu1 %vm1338_vm6, %v2547_v28 }
 0x91c   : > { %v4048_v31 = vpop.f32.mrf.mxu0  ;;  %4050 = vmatpush3.msk.msra.mxu1 %vm1338_vm6, %v2547_v28  ;;  %v3647_v28 = vld [vmem:[%s5143_s13 + $0x90] sm:$0xff] }
 0x91d   : > { %4052 = vmatmul.mubr.msk.f32.vlgmr.msra.gmra.mxu1 %vm1334_vm7, %v3605_v29  ;;  %4054 = vmatprep.subr.mxu1 %v4224_v14  ;;  %v2993_v29 = vld [vmem:[%s5143_s13 + $0x10] sm:$0xff]  ;;  %v2992_v31 = vld [vmem:[%s5143_s13 + $0x8] sm:$0xff] }
 0x91e   : > { %4055 = vmatpush3.msra.mxu1 %v3618_v30  ;;  %4074 = vmatprep.mubr.msk.f32.mxu1 %vm4226_vm2, %v4224_v14  ;;  %v3646_v30 = vld [vmem:[%s5143_s13 + $0x88] sm:$0xff] }
 0x91f   : > { %4056 = vmatprep.subr.mxu1 %v4224_v14 }
 0x920   : > { %4057 = vmatpush3.msra.mxu1 %v3617_v32  ;;  %v3645_v32 = vld [vmem:[%s5143_s13 + $0x80] sm:$0xff] }
 0x921   : > { %4058 = vmatprep.subr.mxu1 %v4224_v14 }
 0x922   : > { %4059 = vmatpush3.msra.mxu1 %v3616_v33  ;;  %v2991_v33 = vld [vmem:[%s5143_s13] sm:$0xff] }
 0x923   : > { %4060 = vmatprep.subr.mxu1 %v4224_v14 }
 0x924   : > { %4061 = vmatpush3.msra.mxu1 %v3615_v34  ;;  %v3644_v34 = vld [vmem:[%s5143_s13 + $0x78] sm:$0xff] }
 0x925   : > { %4062 = vmatprep.subr.mxu1 %v4224_v14 }
 0x926   : > { %4063 = vmatpush3.msra.mxu1 %v3614_v35 }
 0x927   : > { %4064 = vmatprep.subr.mxu1 %v4224_v14 }
 0x928   : > { %4065 = vmatpush3.msra.mxu1 %v3613_v36 }
 0x929   : > { %4066 = vmatprep.subr.mxu1 %v4224_v14 }
 0x92a   : > { %4067 = vmatpush3.msra.mxu1 %v3612_v37  ;;  %v3641_v37 = vld [vmem:[%s5142_s12] ss:$0 sm:$0xff] }
 0x92b   : > { %4068 = vmatprep.subr.mxu1 %v4224_v14 }
 0x92c   : > { %4069 = vmatpush3.msra.mxu1 %v3611_v38 }
 0x92d   : > { %4070 = vmatprep.subr.mxu1 %v4224_v14 }
 0x92e   : > { %4071 = vmatpush3.msra.mxu1 %v3610_v39 }
 0x92f   : > { %4072 = vmatprep.subr.mxu1 %v4224_v14 }
 0x930   : > { %4073 = vmatpush3.msra.mxu1 %v3609_v40 }
 0x931   : > { %4075 = vmatmul.mubr.msk.f32.vlgmr.msra.gmra.mxu1 %vm1176_vm5, %v4791_v3 }
 0x932   : > { %4107 = vmatprep.mubr.msk.f32.mxu1 %vm1334_vm7, %v3636_v61  ;;  %v3675_v61 = vld [vmem:[%s5145_s15] ss:$0 sm:$0xff] }
 0x9dd   : > { %v4053_v43 = vpop.f32.mrf.mxu1 }
 0x9de   : > { %v4919_v45 = vadd.f32 %v4053_v43, %v2467_v26  ;;  %v3648_v26 = vld [vmem:[%s5143_s13 + $0x98] sm:$0xff] }
 0x9df   : > { %v2629_v46 = vpop.f32.mrf.mxu1 }
 0x9e0   : > { %v4921_v47 = vadd.f32 %v2629_v46, %v2462_v44  ;;  %v3661_v44 = vld [vmem:[%s5144_s14 + $0x20] sm:$0xff] }
 0x9f1   : > { %v2717_v48 = vpop.f32.mrf.mxu1 }
 0x9f2   : > { %4077 = vmatprep.subr.msk.mxu0 %vm1338_vm6, %v2717_v48 }
 0x9f3   : > { %v4076_v51 = vpop.f32.mrf.mxu1  ;;  %4078 = vmatpush3.msk.msra.mxu0 %vm1338_vm6, %v2717_v48  ;;  %v3662_v48 = vld [vmem:[%s5144_s14 + $0x28] sm:$0xff] }
 0x9f4   : > { %4080 = vmatmul.mubr.msk.f32.vlgmr.msra.gmra.mxu0 %vm1334_vm7, %v3621_v49  ;;  %4082 = vmatprep.subr.mxu0 %v4224_v14  ;;  %v3663_v49 = vld [vmem:[%s5144_s14 + $0x30] sm:$0xff]  ;;  %v3664_v51 = vld [vmem:[%s5144_s14 + $0x38] sm:$0xf] }
 0x9f5   : > { %4083 = vmatpush3.msra.mxu0 %v3634_v50  ;;  %4102 = vmatprep.mubr.msk.f32.mxu0 %vm4226_vm2, %v4224_v14 }
 0x9f6   : > { %4084 = vmatprep.subr.mxu0 %v4224_v14 }
 0x9f7   : > { %4085 = vmatpush3.msra.mxu0 %v3633_v52  ;;  %v3088_v52 = vld [vmem:[%s5144_s14] sm:$0xff] }
 0x9f8   : > { %4086 = vmatprep.subr.mxu0 %v4224_v14 }
 0x9f9   : > { %4087 = vmatpush3.msra.mxu0 %v3632_v53  ;;  %v3089_v53 = vld [vmem:[%s5144_s14 + $0x8] sm:$0xff] }
 0x9fa   : > { %4088 = vmatprep.subr.mxu0 %v4224_v14 }
 0x9fb   : > { %4089 = vmatpush3.msra.mxu0 %v3631_v54  ;;  %v3090_v54 = vld [vmem:[%s5144_s14 + $0x10] sm:$0xff] }
 0x9fc   : > { %4090 = vmatprep.subr.mxu0 %v4224_v14 }
 0x9fd   : > { %4091 = vmatpush3.msra.mxu0 %v3630_v55  ;;  %v3091_v55 = vld [vmem:[%s5144_s14 + $0x18] sm:$0xf] }
 0x9fe   : > { %4092 = vmatprep.subr.mxu0 %v4224_v14 }
 0x9ff   : > { %4093 = vmatpush3.msra.mxu0 %v3629_v56 }
 0xa00   : > { %4094 = vmatprep.subr.mxu0 %v4224_v14 }
 0xa01   : > { %4095 = vmatpush3.msra.mxu0 %v3628_v57 }
 0xa02   : > { %4096 = vmatprep.subr.mxu0 %v4224_v14 }
 0xa03   : > { %4097 = vmatpush3.msra.mxu0 %v3627_v58 }
 0xa04   : > { %4098 = vmatprep.subr.mxu0 %v4224_v14 }
 0xa05   : > { %4099 = vmatpush3.msra.mxu0 %v3626_v59 }
 0xa06   : > { %4100 = vmatprep.subr.mxu0 %v4224_v14  ;;  %v3657_v14 = vld [vmem:[%s5143_s13 + $0xe0] sm:$0xff] }
 0xa07   : > { %4101 = vmatpush3.msra.mxu0 %v3625_v60 }
 0xa08   : > { %4103 = vmatmul.mubr.msk.f32.vlgmr.msra.gmra.mxu0 %vm1176_vm5, %v4791_v3  ;;  %4143 = vmatprep.subr.mxu0 %v3658_v62  ;;  %v3652_v3 = vld [vmem:[%s5143_s13 + $0xb8] sm:$0xff] }
 0xa09   : > { %4144 = vmatpush3.msra.mxu0 %v3658_v62 }
 0xa0a   : > { %4145 = vmatprep.subr.mxu0 %v3657_v14 }
 0xa0b   : > { %4146 = vmatpush3.msra.mxu0 %v3657_v14 }
 0xa0c   : > { %4147 = vmatprep.subr.mxu0 %v3656_v63 }
 0xa0d   : > { %4148 = vmatpush3.msra.mxu0 %v3656_v63 }
 0xa0e   : > { %4149 = vmatprep.subr.mxu0 %v3655_v0 }
 0xa0f   : > { %4150 = vmatpush3.msra.mxu0 %v3655_v0 }
 0xa10   : > { %4151 = vmatprep.subr.mxu0 %v3654_v1 }
 0xa11   : > { %4152 = vmatpush3.msra.mxu0 %v3654_v1 }
 0xa12   : > { %4153 = vmatprep.subr.mxu0 %v3653_v2 }
 0xa13   : > { %4154 = vmatpush3.msra.mxu0 %v3653_v2 }
 0xa14   : > { %4155 = vmatprep.subr.mxu0 %v3652_v3 }
 0xa15   : > { %4156 = vmatpush3.msra.mxu0 %v3652_v3 }
 0xa16   : > { %4157 = vmatprep.subr.mxu0 %v3651_v4 }
 0xa17   : > { %4158 = vmatpush3.msra.mxu0 %v3651_v4 }
 0xa18   : > { %4159 = vmatprep.subr.mxu0 %v3650_v5 }
 0xa19   : > { %4160 = vmatpush3.msra.mxu0 %v3650_v5 }
 0xa1a   : > { %4161 = vmatprep.subr.mxu0 %v3649_v6 }
 0xa1b   : > { %4162 = vmatpush3.msra.mxu0 %v3649_v6 }
 0xa1c   : > { %4163 = vmatprep.subr.mxu0 %v3648_v26 }
 0xa1d   : > { %4164 = vmatpush3.msra.mxu0 %v3648_v26 }
 0xa1e   : > { %4165 = vmatprep.subr.mxu0 %v3647_v28 }
 0xa1f   : > { %4166 = vmatpush3.msra.mxu0 %v3647_v28 }
 0xa20   : > { %4167 = vmatprep.subr.mxu0 %v3646_v30 }
 0xa21   : > { %4168 = vmatpush3.msra.mxu0 %v3646_v30 }
 0xa22   : > { %4169 = vmatprep.subr.mxu0 %v3645_v32 }
 0xa23   : > { %4170 = vmatpush3.msra.mxu0 %v3645_v32 }
 0xa24   : > { %4171 = vmatprep.subr.mxu0 %v3644_v34 }
 0xa25   : > { %4172 = vmatpush3.msra.mxu0 %v3644_v34 }
 0xab4   : > { %v4081_v7 = vpop.f32.mrf.mxu0 }
 0xab5   : > { %v5008_v8 = vadd.f32 %v4081_v7, %v4919_v45 }
 0xab6   : > { %v2799_v9 = vpop.f32.mrf.mxu0 }
 0xab7   : > { %v5011_v10 = vadd.f32 %v2799_v9, %v4921_v47 }
 0xac8   : > { %v2887_v11 = vpop.f32.mrf.mxu0 }
 0xac9   : > { %4105 = vmatprep.subr.msk.mxu1 %vm1338_vm6, %v2887_v11 }
 0xaca   : > { %v4104_v15 = vpop.f32.mrf.mxu0  ;;  %4106 = vmatpush3.msk.msra.mxu1 %vm1338_vm6, %v2887_v11 }
 0xacb   : > { %4108 = vmatmul.mubr.msk.f32.vlgmr.msra.gmra.mxu1 %vm1334_vm7, %v3637_v12  ;;  %4110 = vmatprep.subr.mxu1 %v3005_v13 }
 0xacc   : > { %4111 = vmatpush3.msra.mxu1 %v3005_v13 }
 0xacd   : > { %4112 = vmatprep.subr.mxu1 %v3004_v16 }
 0xace   : > { %4113 = vmatpush3.msra.mxu1 %v3004_v16 }
 0xacf   : > { %4114 = vmatprep.subr.mxu1 %v3003_v17 }
 0xad0   : > { %4115 = vmatpush3.msra.mxu1 %v3003_v17 }
 0xad1   : > { %4116 = vmatprep.subr.mxu1 %v3002_v18 }
 0xad2   : > { %4117 = vmatpush3.msra.mxu1 %v3002_v18 }
 0xad3   : > { %4118 = vmatprep.subr.mxu1 %v3001_v19 }
 0xad4   : > { %4119 = vmatpush3.msra.mxu1 %v3001_v19 }
 0xad5   : > { %4120 = vmatprep.subr.mxu1 %v3000_v20 }
 0xad6   : > { %4121 = vmatpush3.msra.mxu1 %v3000_v20 }
 0xad7   : > { %4122 = vmatprep.subr.mxu1 %v2999_v21 }
 0xad8   : > { %4123 = vmatpush3.msra.mxu1 %v2999_v21 }
 0xad9   : > { %4124 = vmatprep.subr.mxu1 %v2998_v22 }
 0xada   : > { %4125 = vmatpush3.msra.mxu1 %v2998_v22 }
 0xadb   : > { %4126 = vmatprep.subr.mxu1 %v2997_v23 }
 0xadc   : > { %4127 = vmatpush3.msra.mxu1 %v2997_v23 }
 0xadd   : > { %4128 = vmatprep.subr.mxu1 %v2996_v24 }
 0xade   : > { %4129 = vmatpush3.msra.mxu1 %v2996_v24 }
 0xadf   : > { %4130 = vmatprep.subr.mxu1 %v2995_v25 }
 0xae0   : > { %4131 = vmatpush3.msra.mxu1 %v2995_v25 }
 0xae1   : > { %4132 = vmatprep.subr.mxu1 %v2994_v27 }
 0xae2   : > { %4133 = vmatpush3.msra.mxu1 %v2994_v27 }
 0xae3   : > { %4134 = vmatprep.subr.mxu1 %v2993_v29 }
 0xae4   : > { %4135 = vmatpush3.msra.mxu1 %v2993_v29 }
 0xae5   : > { %4136 = vmatprep.subr.mxu1 %v2992_v31 }
 0xae6   : > { %4137 = vmatpush3.msra.mxu1 %v2992_v31 }
 0xae7   : > { %4138 = vmatprep.subr.mxu1 %v2991_v33 }
 0xae8   : > { %4139 = vmatpush3.msra.mxu1 %v2991_v33 }
 0xb8b   : > { %v4109_v35 = vpop.f32.mrf.mxu1 }
 0xb8c   : > { %v2979_v36 = vadd.f32 %v4109_v35, %v5008_v8 }
 0xb8d   : > { %v2969_v38 = vpop.f32.mrf.mxu1 }
 0xb8e   : > { %v2978_v39 = vadd.f32 %v2969_v38, %v5011_v10  ;;  %v2988_v40 = vadd.f32 %v3641_v37, %v2979_v36 }
 0xb90   : > { %v2987_v41 = vadd.f32 %v3641_v37, %v2978_v39  ;;  %v2990_v43 = vmax.f32 %v2988_v40, 0.0 }
 0xb92   : > { %v2989_v42 = vmax.f32 %v2987_v41, 0.0 }
 0xb94   : > { %4140 = vmatprep.mubr.msk.f32.mxu1 %vm3006_vm11, %v2989_v42  ;;  %4173 = vmatprep.mubr.msk.f32.mxu0 %vm3006_vm11, %v2989_v42 }
 0xb95   : > { %4141 = vmatmul.mubr.msk.f32.vlgmr.msra.gmra.mxu1 %vm3006_vm11, %v2990_v43  ;;  %4174 = vmatmul.mubr.msk.f32.vlgmr.msra.gmra.mxu0 %vm3006_vm11, %v2990_v43 }
 0xb96   : > { %4180 = vmatprep.mubr.msk.f32.mxu1 %vm3188_vm12, %v3661_v44 }
 0xc55   : > { %v4175_v45 = vpop.f32.mrf.mxu0  ;;  %v4142_v46 = vpop.f32.mrf.mxu1 }
 0xc56   : > { %4176 = vmatprep.subr.msk.mxu1 %vm3201_vm13, %v4175_v45 }
 0xc57   : > { %v3174_v47 = vpop.f32.mrf.mxu0  ;;  %4177 = vmatpush3.msk.msra.mxu1 %vm3201_vm13, %v4175_v45  ;;  %v3079_v50 = vpop.f32.mrf.mxu1 }
 0xc58   : > { %4178 = vmatprep.subr.mxu1 %v3174_v47 }
 0xc59   : > { %4179 = vmatpush3.msra.mxu1 %v3174_v47 }
 0xc5a   : > { %4181 = vmatmul.mubr.msk.f32.vlgmr.msra.gmra.mxu1 %vm3188_vm12, %v3662_v48  ;;  %4186 = vmatprep.subr.msk.mxu1 %vm3201_vm13, %v4142_v46 }
 0xc5b   : > { %4187 = vmatpush3.msk.msra.mxu1 %vm3201_vm13, %v4142_v46  ;;  %4183 = vmatprep.mubr.msk.f32.mxu1 %vm3188_vm12, %v3663_v49 }
 0xc5c   : > { %4188 = vmatprep.subr.mxu1 %v3079_v50 }
 0xc5d   : > { %4189 = vmatpush3.msra.mxu1 %v3079_v50 }
 0xc5e   : > { %4184 = vmatmul.mubr.msk.f32.gmra.mxu1 %vm3188_vm12, %v3664_v51 }
 0xc5f   : > { %4190 = vmatprep.mubr.msk.f32.mxu1 %vm3188_vm12, %v3088_v52 }
 0xc62   : > { %4191 = vmatmul.mubr.msk.f32.vlgmr.msra.gmra.mxu1 %vm3188_vm12, %v3089_v53 }
 0xc63   : > { %4193 = vmatprep.mubr.msk.f32.mxu1 %vm3188_vm12, %v3090_v54 }
 0xc66   : > { %4194 = vmatmul.mubr.msk.f32.gmra.mxu1 %vm3188_vm12, %v3091_v55 }
 0xd1a   : > { %v4182_v56 = vpop.f32.mrf.mxu1 }
 0xd1c   : > { %v3271_v57 = vpop.f32.mrf.mxu1 }
 0xd1e   : > { %v4185_v58 = vpop.f32.mrf.mxu1 }
 0xd20   : > { %v3281_v59 = vpop.f32.mrf.mxu1 }
 0xd22   : > { %v4192_v60 = vpop.f32.mrf.mxu1 }
 0xd23   : > { %v3377_v62 = vadd.f32 %v4192_v60, %v4182_v56 }
 0xd24   : > { %v3371_v14 = vpop.f32.mrf.mxu1 }
 0xd25   : > { %v3398_v63 = vadd.f32 %v3675_v61, %v3377_v62  ;;  %v3372_v0 = vadd.f32 %v3371_v14, %v3271_v57 }
 0xd26   : > { %v4195_v1 = vpop.f32.mrf.mxu1 }
 0xd27   : > { %4208 = vtanh.f32 %v3398_v63  ;;  %v3397_v2 = vadd.f32 %v3675_v61, %v3372_v0  ;;  %v3387_v3 = vadd.f32 %v4195_v1, %v4185_v58 }
 0xd28   : > { %v3381_v4 = vpop.f32.mrf.mxu1 }
 0xd29   : > { %4210 = vtanh.f32 %v3397_v2  ;;  %v3400_v5 = vadd.f32 %v3675_v61, %v3387_v3  ;;  %v3382_v6 = vadd.f32 %v3381_v4, %v3281_v59 }
 0xd2b   : > { %4212 = vtanh.f32 %v3400_v5  ;;  %v3399_v7 = vadd.f32 %v3675_v61, %v3382_v6 }
 0xd2d   : > { %4214 = vtanh.f32 %v3399_v7 }
 0xd34   : > { %v4209_v8 = vpop.eup %4208 }
 0xd35   : > { %3406 = vst.msk [vmem:[%s521_s17 + $0x8] sm:$0xff] %vm534_vm1, %v4209_v8 }
 0xd36   : > { %v4211_v9 = vpop.eup %4210 }
 0xd37   : > { %3405 = vst.msk [vmem:[%s521_s17] sm:$0xff] %vm534_vm1, %v4211_v9 }
 0xd38   : > { %v4213_v10 = vpop.eup %4212 }
 0xd39   : > { %3409 = vst.msk [vmem:[%s521_s17 + $0x18] sm:$0xf] %vm3408_vm14, %v4213_v10 }
 0xd3a   : > { %v4215_v11 = vpop.eup %4214 }
 0xd3b   : > { %3407 = vst.msk [vmem:[%s521_s17 + $0x10] sm:$0xff] %vm534_vm1, %v4215_v11 }
 0xd3c PF: > { %s26_s21 = sadd.s32 1, %s4222_s21  }
 0xd3d   : > { %p23_p4 = scmp.ge.s32.totalorder %s26_s21, 4  }
 0xd3f   :  { %25 = sbr.rel (!%p23_p4) target bundleno = 2 (0x2), region = 136 }

</bundles_post_ra>
